<compile_context>
chip_gen: v7x
topology: tpu7x:2x2x1
jax: 0.10.0
libtpu: 0.0.40
codegen_flags: <defaults>
</compile_context>

<pallas_src>
import math
import functools

import jax
import jax.numpy as jnp
from jax.experimental import pallas as pl
from jax.experimental.pallas import tpu as pltpu

_EPS = 1e-5  # torch.nn.LayerNorm default


def _layernorm(x, g, b):
    mu = jnp.mean(x, axis=-1, keepdims=True)
    xc = x - mu
    var = jnp.mean(xc * xc, axis=-1, keepdims=True)
    return xc * jax.lax.rsqrt(var + _EPS) * g + b


def enc_tns_kernel(
    x_ref,                    # (B_blk, S, D) f32   input block (per batch block)
    g1_ref, b1_ref,           # (L, 1, D) f32       norm1
    wqkv_ref, bqkv_ref,       # (L, D, 3D) bf16 / (L, 1, 3D) f32   fused QKV
    wo_ref, bo_ref,           # (L, D, D) bf16 / (L, 1, D) f32     out_proj
    g2_ref, b2_ref,           # (L, 1, D) f32       ln_in of LayBlockDRT
    w0_ref, b0_ref,           # (L, D, Dff) bf16 / (L, 1, Dff) f32 dense0 d->4d
    w1_ref, b1d_ref,          # (L, Dff, D) bf16 / (L, 1, D) f32   dense1 4d->d
    gf_ref, bf_ref,           # (1, D) f32          final EncTNS LayerNorm
    out_ref,                  # (B_blk, S, D) f32
    z_ref,                    # (1, 1, L) f32       zsL diag, resident per batch block
    x_scr,                    # VMEM (B_blk*S, D) f32 resident activation
    *, nhead,
):
    lay = pl.program_id(1)
    n_lay = pl.num_programs(1)
    Bblk, S, D = x_ref.shape
    BS = Bblk * S
    hd = D // nhead

    @pl.when(lay == 0)
    def _():
        x_scr[...] = x_ref[...].reshape(BS, D)
        z_ref[...] = jnp.zeros_like(z_ref)

    x = x_scr[...]                                     # (BS, D) f32 residual stream

    # ---- norm1 + fused-QKV self-attention (MyMHA, eval, no masks) ----
    xn = _layernorm(x, g1_ref[lay], b1_ref[lay])
    qkv = jnp.dot(xn.astype(jnp.bfloat16), wqkv_ref[lay],
                  preferred_element_type=jnp.float32) + bqkv_ref[lay]     # (BS, 3D) f32
    qkv_b = qkv.astype(jnp.bfloat16).reshape(Bblk, S, 3 * D)

    # stack heads into the batch dim -> two batched MXU dots cover all heads/batches
    def _split_heads(off):
        return jnp.concatenate(
            [qkv_b[:, :, off + h * hd: off + (h + 1) * hd] for h in range(nhead)],
            axis=0)                                    # (nhead*B_blk, S, hd) bf16
    q = _split_heads(0)
    k = _split_heads(D)
    v = _split_heads(2 * D)

    # scores: 1/sqrt(head_dim) already folded into Wq/bq at packing time
    s = jax.lax.dot_general(q, k, (((2,), (2,)), ((0,), (0,))),
                            preferred_element_type=jnp.float32)           # (nh*Bb, S, S)
    s = s - jnp.max(s, axis=-1, keepdims=True)
    p = jnp.exp(s)
    denom = jnp.sum(p, axis=-1, keepdims=True)
    hv = jax.lax.dot_general(p.astype(jnp.bfloat16), v,
                             (((2,), (1,)), ((0,), (0,))),
                             preferred_element_type=jnp.float32)          # (nh*Bb, S, hd)
    hv = hv * pl.reciprocal(denom, approx=True)        # deferred softmax normalization

    # concat heads along lanes, single fused output projection
    attn_heads = jnp.concatenate(
        [hv[h * Bblk:(h + 1) * Bblk] for h in range(nhead)], axis=-1)     # (Bb, S, D) f32
    attn = jnp.dot(attn_heads.reshape(BS, D).astype(jnp.bfloat16), wo_ref[lay],
                   preferred_element_type=jnp.float32) + bo_ref[lay]

    x1 = attn + x                                      # res1: bypass = layer input

    # ---- LayBlockDRT: ln_in -> dense0(ReLU, d->4d) -> dense1(4d->d) -> residual ----
    xn2 = _layernorm(x1, g2_ref[lay], b2_ref[lay])
    h0 = jnp.dot(xn2.astype(jnp.bfloat16), w0_ref[lay],
                 preferred_element_type=jnp.float32) + b0_ref[lay]        # (BS, Dff) f32
    h0 = jnp.maximum(h0, 0.0)                          # ReLU

    # zsL: fraction of zero post-ReLU activations (this batch block, this layer),
    # accumulated in the resident lane-dense (1,1,L) block; HBM writeback happens
    # once per batch block instead of one 4-byte store per grid step.
    zcol = jnp.mean((h0 == 0.0).astype(jnp.float32), axis=-1, keepdims=True)   # (BS, 1)
    zfrac = jnp.mean(zcol, axis=0, keepdims=True)                              # (1, 1)
    lane = jax.lax.broadcasted_iota(jnp.int32, z_ref.shape, 2)
    z_ref[...] = jnp.where(lane == lay, zfrac, z_ref[...])

    h1 = jnp.dot(h0.astype(jnp.bfloat16), w1_ref[lay],
                 preferred_element_type=jnp.float32) + b1d_ref[lay]
    new_x = h1 + x1                                    # residual of LayBlockDRT
    x_scr[...] = new_x

    # ---- final EncTNS LayerNorm, written once on the last layer step ----
    @pl.when(lay == n_lay - 1)
    def _():
        out_ref[...] = _layernorm(new_x, gf_ref[...], bf_ref[...]).reshape(Bblk, S, D)


_PARAM_ORDER = ("g1", "b1", "wqkv", "bqkv", "wo", "bo",
                "g2", "b2", "w0", "b0", "w1", "b1d")


def init_layer_params(key, d_model, dns_scale):
    """Deterministic synthetic init (bert-style: N(0, 0.02) weights, zero biases)."""
    ks = jax.random.split(key, 6)
    n = lambda k, shape: 0.02 * jax.random.normal(k, shape, jnp.float32)
    D, Dff = d_model, d_model * dns_scale
    return {
        "g1": jnp.ones((1, D), jnp.float32), "b1": jnp.zeros((1, D), jnp.float32),
        "wq": n(ks[0], (D, D)), "wk": n(ks[1], (D, D)), "wv": n(ks[2], (D, D)),
        "bq": jnp.zeros((1, D), jnp.float32),
        "bk": jnp.zeros((1, D), jnp.float32),
        "bv": jnp.zeros((1, D), jnp.float32),
        "wo": n(ks[3], (D, D)), "bo": jnp.zeros((1, D), jnp.float32),
        "g2": jnp.ones((1, D), jnp.float32), "b2": jnp.zeros((1, D), jnp.float32),
        "w0": n(ks[4], (D, Dff)), "b0": jnp.zeros((1, Dff), jnp.float32),
        "w1": n(ks[5], (Dff, D)), "b1d": jnp.zeros((1, D), jnp.float32),
    }


def pack_layer_params(layer_params, nhead):
    """Stack per-layer params on a leading layer axis, fuse QKV into (D,3D),
    fold the 1/sqrt(head_dim) scale into Wq/bq, cast matmul weights to bf16."""
    D = layer_params[0]["wq"].shape[0]
    scale = 1.0 / math.sqrt(D // nhead)
    stk = lambda k: jnp.stack([p[k] for p in layer_params], axis=0)
    wqkv = jnp.concatenate([stk("wq") * scale, stk("wk"), stk("wv")], axis=-1)
    bqkv = jnp.concatenate([stk("bq") * scale, stk("bk"), stk("bv")], axis=-1)
    return {
        "g1": stk("g1"), "b1": stk("b1"),
        "wqkv": wqkv.astype(jnp.bfloat16), "bqkv": bqkv,
        "wo": stk("wo").astype(jnp.bfloat16), "bo": stk("bo"),
        "g2": stk("g2"), "b2": stk("b2"),
        "w0": stk("w0").astype(jnp.bfloat16), "b0": stk("b0"),
        "w1": stk("w1").astype(jnp.bfloat16), "b1d": stk("b1d"),
    }


def _resident_spec(arr):
    """Whole stacked tensor as one full-extent block with a constant index_map:
    fetched into VMEM once for the entire grid, never re-fetched per (b, l)."""
    nd = arr.ndim
    return pl.BlockSpec(arr.shape, lambda b, l, _nd=nd: (0,) * _nd)


def _vmem_capacity_bytes():
    try:
        cap = getattr(pltpu.get_tpu_info(), "vmem_capacity_bytes", None)
        if cap:
            return int(cap)
    except Exception:
        pass
    return 64 << 20                      # conservative fallback: v7x physical VMEM


def _vmem_limit_bytes(B_blk, S, D, Dff, nhead, packed, extra_params):
    """Rough VMEM budget: resident weights (x2 buffering) + io blocks + temps,
    clamped to ~80% of the chip generation's physical VMEM for headroom."""
    weights = sum(int(v.nbytes) for v in packed.values())
    weights += sum(int(v.nbytes) for v in extra_params)
    BS = B_blk * S
    io = 2 * 2 * (B_blk * S * D * 4)                       # x + out blocks, double-buffered
    scratch = BS * D * 4
    temps = 4 * (BS * 3 * D * 4 + nhead * B_blk * S * S * 4
                 + 2 * BS * Dff * 4 + 6 * BS * D * 4)
    est = 2 * weights + io + scratch + temps + (4 << 20)
    budget = int(0.8 * _vmem_capacity_bytes())
    return int(min(budget, max(est, 16 << 20)))


def enc_tns_forward(x, layer_params, norm_g, norm_b, nhead, batch_block=None):
    """EncTNS._encode for the default config (no pos_emb, no TAT layers)."""
    B, S, D = x.shape
    L = len(layer_params)
    Dff = layer_params[0]["w0"].shape[-1]
    packed = pack_layer_params(layer_params, nhead)

    if batch_block is None:
        half = max(1, B // 2)            # keep >=2 parallel blocks (feeds both v7x TCs)
        batch_block = half if B % half == 0 else 1
    assert B % batch_block == 0
    nb = B // batch_block

    kernel = functools.partial(enc_tns_kernel, nhead=nhead)
    out, z = pl.pallas_call(
        kernel,
        out_shape=(jax.ShapeDtypeStruct((B, S, D), jnp.float32),
                   jax.ShapeDtypeStruct((nb, 1, L), jnp.float32)),
        grid=(nb, L),
        in_specs=[pl.BlockSpec((batch_block, S, D), lambda b, l: (b, 0, 0))]
                 + [_resident_spec(packed[k]) for k in _PARAM_ORDER]
                 + [_resident_spec(norm_g), _resident_spec(norm_b)],
        out_specs=(pl.BlockSpec((batch_block, S, D), lambda b, l: (b, 0, 0)),
                   pl.BlockSpec((1, 1, L), lambda b, l: (b, 0, 0))),
        scratch_shapes=[pltpu.VMEM((batch_block * S, D), jnp.float32)],
        compiler_params=pltpu.CompilerParams(
            dimension_semantics=("parallel", "arbitrary"),
            vmem_limit_bytes=_vmem_limit_bytes(batch_block, S, D, Dff, nhead,
                                               packed, (norm_g, norm_b))),
    )(x, *[packed[k] for k in _PARAM_ORDER], norm_g, norm_b)

    # batch-block-averaged zero fraction per layer (equal element counts per block)
    zsL = [jnp.mean(z[:, 0, i]) for i in range(L)]
    return {"out": out, "zsL": zsL}


if __name__ == "__main__":
    # small shapes consistent with the module (d_model, nhead, dns_scale, layers)
    B, S, D, NHEAD, DNS_SCALE, NUM_LAYERS = 4, 8, 32, 4, 4, 2

    key = jax.random.PRNGKey(0)
    kx, *kl = jax.random.split(key, NUM_LAYERS + 2)
    x = jax.random.normal(kx, (B, S, D), jnp.float32)

    layer_params = [init_layer_params(kl[i], D, DNS_SCALE) for i in range(NUM_LAYERS)]
    norm_g = jnp.ones((1, D), jnp.float32)
    norm_b = jnp.zeros((1, D), jnp.float32)

    res = enc_tns_forward(x, layer_params, norm_g, norm_b, NHEAD)
    out = jax.block_until_ready(res["out"])
    zs = [float(jax.block_until_ready(zz)) for zz in res["zsL"]]

    assert out.shape == (B, S, D)
    assert bool(jnp.all(jnp.isfinite(out)))
    assert len(zs) == NUM_LAYERS and all(0.0 <= zv <= 1.0 for zv in zs)
    print("KERNEL_OK")
</pallas_src>

<mosaic_0001>
module attributes {stable_mosaic.version = 11 : i64} {
  func.func @enc_tns_kernel(%arg0: i32, %arg1: i32, %arg2: memref<2x8x32xf32, #tpu.memory_space<vmem>>, %arg3: memref<2x1x32xf32, #tpu.memory_space<vmem>>, %arg4: memref<2x1x32xf32, #tpu.memory_space<vmem>>, %arg5: memref<2x32x96xbf16, #tpu.memory_space<vmem>>, %arg6: memref<2x1x96xf32, #tpu.memory_space<vmem>>, %arg7: memref<2x32x32xbf16, #tpu.memory_space<vmem>>, %arg8: memref<2x1x32xf32, #tpu.memory_space<vmem>>, %arg9: memref<2x1x32xf32, #tpu.memory_space<vmem>>, %arg10: memref<2x1x32xf32, #tpu.memory_space<vmem>>, %arg11: memref<2x32x128xbf16, #tpu.memory_space<vmem>>, %arg12: memref<2x1x128xf32, #tpu.memory_space<vmem>>, %arg13: memref<2x128x32xbf16, #tpu.memory_space<vmem>>, %arg14: memref<2x1x32xf32, #tpu.memory_space<vmem>>, %arg15: memref<1x32xf32, #tpu.memory_space<vmem>>, %arg16: memref<1x32xf32, #tpu.memory_space<vmem>>, %arg17: memref<2x8x32xf32, #tpu.memory_space<vmem>>, %arg18: memref<1x1x2xf32, #tpu.memory_space<vmem>>, %arg19: memref<16x32xf32, #tpu.memory_space<vmem>>) attributes {dimension_semantics = [#tpu.dimension_semantics<parallel>, #tpu.dimension_semantics<arbitrary>], iteration_bounds = array<i64: 2, 2>, scalar_prefetch = 0 : i64, scratch_operands = 1 : i64, tpu.core_type = #tpu.core_type<tc>, window_params = [{transform_indices = @transform_0, window_bounds = array<i64: 2, 8, 32>}, {pipeline_mode = #tpu.pipeline_mode<synchronous>, transform_indices = @transform_1, window_bounds = array<i64: 2, 1, 32>}, {pipeline_mode = #tpu.pipeline_mode<synchronous>, transform_indices = @transform_2, window_bounds = array<i64: 2, 1, 32>}, {pipeline_mode = #tpu.pipeline_mode<synchronous>, transform_indices = @transform_3, window_bounds = array<i64: 2, 32, 96>}, {pipeline_mode = #tpu.pipeline_mode<synchronous>, transform_indices = @transform_4, window_bounds = array<i64: 2, 1, 96>}, {pipeline_mode = #tpu.pipeline_mode<synchronous>, transform_indices = @transform_5, window_bounds = array<i64: 2, 32, 32>}, {pipeline_mode = #tpu.pipeline_mode<synchronous>, transform_indices = @transform_6, window_bounds = array<i64: 2, 1, 32>}, {pipeline_mode = #tpu.pipeline_mode<synchronous>, transform_indices = @transform_7, window_bounds = array<i64: 2, 1, 32>}, {pipeline_mode = #tpu.pipeline_mode<synchronous>, transform_indices = @transform_8, window_bounds = array<i64: 2, 1, 32>}, {pipeline_mode = #tpu.pipeline_mode<synchronous>, transform_indices = @transform_9, window_bounds = array<i64: 2, 32, 128>}, {pipeline_mode = #tpu.pipeline_mode<synchronous>, transform_indices = @transform_10, window_bounds = array<i64: 2, 1, 128>}, {pipeline_mode = #tpu.pipeline_mode<synchronous>, transform_indices = @transform_11, window_bounds = array<i64: 2, 128, 32>}, {pipeline_mode = #tpu.pipeline_mode<synchronous>, transform_indices = @transform_12, window_bounds = array<i64: 2, 1, 32>}, {pipeline_mode = #tpu.pipeline_mode<synchronous>, transform_indices = @transform_13, window_bounds = array<i64: 1, 32>}, {pipeline_mode = #tpu.pipeline_mode<synchronous>, transform_indices = @transform_14, window_bounds = array<i64: 1, 32>}, {transform_indices = @transform_15, window_bounds = array<i64: 2, 8, 32>}, {transform_indices = @transform_16, window_bounds = array<i64: 1, 1, 2>}]} {
    %c0_i32 = arith.constant 0 : i32
    %0 = arith.cmpi eq, %arg1, %c0_i32 : i32
    %1 = arith.extui %0 : i1 to i32
    %c0_i32_0 = arith.constant 0 : i32
    %2 = arith.cmpi ne, %1, %c0_i32_0 : i32
    scf.if %2 {
      %c0_58 = arith.constant 0 : index
      %c0_59 = arith.constant 0 : index
      %c0_60 = arith.constant 0 : index
      %160 = vector.load %arg2[%c0_58, %c0_59, %c0_60] : memref<2x8x32xf32, #tpu.memory_space<vmem>>, vector<2x8x32xf32>
      %161 = vector.shape_cast %160 : vector<2x8x32xf32> to vector<16x32xf32>
      %c0_61 = arith.constant 0 : index
      %c0_62 = arith.constant 0 : index
      %162 = vector.load %arg19[%c0_61, %c0_62] : memref<16x32xf32, #tpu.memory_space<vmem>>, vector<16x32xf32>
      tpu.vector_store %arg19[%c0_61, %c0_62], %161 {strides = array<i32>} : memref<16x32xf32, #tpu.memory_space<vmem>>, vector<16x32xf32>,
      %cst_63 = arith.constant 0.000000e+00 : f32
      %163 = vector.broadcast %cst_63 : f32 to vector<1x1x2xf32>
      %c0_64 = arith.constant 0 : index
      %c0_65 = arith.constant 0 : index
      %c0_66 = arith.constant 0 : index
      %164 = vector.load %arg18[%c0_64, %c0_65, %c0_66] : memref<1x1x2xf32, #tpu.memory_space<vmem>>, vector<1x1x2xf32>
      tpu.vector_store %arg18[%c0_64, %c0_65, %c0_66], %163 {strides = array<i32>} : memref<1x1x2xf32, #tpu.memory_space<vmem>>, vector<1x1x2xf32>,
    } else {
    }
    %c0 = arith.constant 0 : index
    %c0_1 = arith.constant 0 : index
    %3 = vector.load %arg19[%c0, %c0_1] : memref<16x32xf32, #tpu.memory_space<vmem>>, vector<16x32xf32>
    %4 = arith.index_cast %arg1 : i32 to index
    %c0_2 = arith.constant 0 : index
    %c0_3 = arith.constant 0 : index
    %5 = vector.load %arg3[%4, %c0_2, %c0_3] : memref<2x1x32xf32, #tpu.memory_space<vmem>>, vector<1x1x32xf32>
    %6 = vector.shape_cast %5 : vector<1x1x32xf32> to vector<1x32xf32>
    %7 = arith.index_cast %arg1 : i32 to index
    %c0_4 = arith.constant 0 : index
    %c0_5 = arith.constant 0 : index
    %8 = vector.load %arg4[%7, %c0_4, %c0_5] : memref<2x1x32xf32, #tpu.memory_space<vmem>>, vector<1x1x32xf32>
    %9 = vector.shape_cast %8 : vector<1x1x32xf32> to vector<1x32xf32>
    %cst = arith.constant dense<0.000000e+00> : vector<16xf32>
    %10 = vector.multi_reduction <add>, %3, %cst [1] : vector<16x32xf32> to vector<16xf32>
    %11 = vector.shape_cast %10 : vector<16xf32> to vector<16x1xf32>
    %cst_6 = arith.constant 3.200000e+01 : f32
    %12 = vector.broadcast %cst_6 : f32 to vector<16x1xf32>
    %13 = arith.divf %11, %12 : vector<16x1xf32>
    %14 = vector.broadcast %13 : vector<16x1xf32> to vector<16x32xf32>
    %15 = arith.subf %3, %14 : vector<16x32xf32>
    %16 = arith.mulf %15, %15 : vector<16x32xf32>
    %cst_7 = arith.constant dense<0.000000e+00> : vector<16xf32>
    %17 = vector.multi_reduction <add>, %16, %cst_7 [1] : vector<16x32xf32> to vector<16xf32>
    %18 = vector.shape_cast %17 : vector<16xf32> to vector<16x1xf32>
    %cst_8 = arith.constant 3.200000e+01 : f32
    %19 = vector.broadcast %cst_8 : f32 to vector<16x1xf32>
    %20 = arith.divf %18, %19 : vector<16x1xf32>
    %cst_9 = arith.constant 9.99999974E-6 : f32
    %21 = vector.broadcast %cst_9 : f32 to vector<16x1xf32>
    %22 = arith.addf %20, %21 : vector<16x1xf32>
    %23 = math.rsqrt %22 : vector<16x1xf32>
    %24 = vector.broadcast %23 : vector<16x1xf32> to vector<16x32xf32>
    %25 = arith.mulf %15, %24 : vector<16x32xf32>
    %26 = vector.broadcast %6 : vector<1x32xf32> to vector<16x32xf32>
    %27 = arith.mulf %25, %26 : vector<16x32xf32>
    %28 = vector.broadcast %9 : vector<1x32xf32> to vector<16x32xf32>
    %29 = arith.addf %27, %28 : vector<16x32xf32>
    %30 = arith.truncf %29 : vector<16x32xf32> to vector<16x32xbf16>
    %31 = arith.index_cast %arg1 : i32 to index
    %c0_10 = arith.constant 0 : index
    %c0_11 = arith.constant 0 : index
    %32 = vector.load %arg5[%31, %c0_10, %c0_11] : memref<2x32x96xbf16, #tpu.memory_space<vmem>>, vector<1x32x96xbf16>
    %33 = vector.shape_cast %32 : vector<1x32x96xbf16> to vector<32x96xbf16>
    %cst_12 = arith.constant dense<0.000000e+00> : vector<16x96xf32>
    %34 = tpu.matmul %30, %33, %cst_12 {dimension_numbers = #tpu.dot_dimension_numbers<[1], [0], [0], [1], [0, 0, 1, 1], [], []>} : vector<16x32xbf16>, vector<32x96xbf16>, vector<16x96xf32> -> vector<16x96xf32>
    %35 = arith.index_cast %arg1 : i32 to index
    %c0_13 = arith.constant 0 : index
    %c0_14 = arith.constant 0 : index
    %36 = vector.load %arg6[%35, %c0_13, %c0_14] : memref<2x1x96xf32, #tpu.memory_space<vmem>>, vector<1x1x96xf32>
    %37 = vector.shape_cast %36 : vector<1x1x96xf32> to vector<1x96xf32>
    %38 = vector.broadcast %37 : vector<1x96xf32> to vector<16x96xf32>
    %39 = arith.addf %34, %38 : vector<16x96xf32>
    %40 = arith.truncf %39 : vector<16x96xf32> to vector<16x96xbf16>
    %41 = vector.shape_cast %40 : vector<16x96xbf16> to vector<2x8x96xbf16>
    %42 = vector.extract_strided_slice %41 {offsets = [0, 0, 0], sizes = [2, 8, 8], strides = [1, 1, 1]} : vector<2x8x96xbf16> to vector<2x8x8xbf16>
    %43 = vector.extract_strided_slice %41 {offsets = [0, 0, 8], sizes = [2, 8, 8], strides = [1, 1, 1]} : vector<2x8x96xbf16> to vector<2x8x8xbf16>
    %44 = vector.extract_strided_slice %41 {offsets = [0, 0, 16], sizes = [2, 8, 8], strides = [1, 1, 1]} : vector<2x8x96xbf16> to vector<2x8x8xbf16>
    %45 = vector.extract_strided_slice %41 {offsets = [0, 0, 24], sizes = [2, 8, 8], strides = [1, 1, 1]} : vector<2x8x96xbf16> to vector<2x8x8xbf16>
    %46 = tpu.concatenate %42, %43, %44, %45 in 0 : vector<2x8x8xbf16>, vector<2x8x8xbf16>, vector<2x8x8xbf16>, vector<2x8x8xbf16> -> vector<8x8x8xbf16>
    %47 = vector.extract_strided_slice %41 {offsets = [0, 0, 32], sizes = [2, 8, 8], strides = [1, 1, 1]} : vector<2x8x96xbf16> to vector<2x8x8xbf16>
    %48 = vector.extract_strided_slice %41 {offsets = [0, 0, 40], sizes = [2, 8, 8], strides = [1, 1, 1]} : vector<2x8x96xbf16> to vector<2x8x8xbf16>
    %49 = vector.extract_strided_slice %41 {offsets = [0, 0, 48], sizes = [2, 8, 8], strides = [1, 1, 1]} : vector<2x8x96xbf16> to vector<2x8x8xbf16>
    %50 = vector.extract_strided_slice %41 {offsets = [0, 0, 56], sizes = [2, 8, 8], strides = [1, 1, 1]} : vector<2x8x96xbf16> to vector<2x8x8xbf16>
    %51 = tpu.concatenate %47, %48, %49, %50 in 0 : vector<2x8x8xbf16>, vector<2x8x8xbf16>, vector<2x8x8xbf16>, vector<2x8x8xbf16> -> vector<8x8x8xbf16>
    %52 = vector.extract_strided_slice %41 {offsets = [0, 0, 64], sizes = [2, 8, 8], strides = [1, 1, 1]} : vector<2x8x96xbf16> to vector<2x8x8xbf16>
    %53 = vector.extract_strided_slice %41 {offsets = [0, 0, 72], sizes = [2, 8, 8], strides = [1, 1, 1]} : vector<2x8x96xbf16> to vector<2x8x8xbf16>
    %54 = vector.extract_strided_slice %41 {offsets = [0, 0, 80], sizes = [2, 8, 8], strides = [1, 1, 1]} : vector<2x8x96xbf16> to vector<2x8x8xbf16>
    %55 = vector.extract_strided_slice %41 {offsets = [0, 0, 88], sizes = [2, 8, 8], strides = [1, 1, 1]} : vector<2x8x96xbf16> to vector<2x8x8xbf16>
    %56 = tpu.concatenate %52, %53, %54, %55 in 0 : vector<2x8x8xbf16>, vector<2x8x8xbf16>, vector<2x8x8xbf16>, vector<2x8x8xbf16> -> vector<8x8x8xbf16>
    %cst_15 = arith.constant dense<0.000000e+00> : vector<8x8x8xf32>
    %57 = tpu.matmul %46, %51, %cst_15 {dimension_numbers = #tpu.dot_dimension_numbers<[2], [2], [1], [1], [0, 0, 0, 1, 1, 1], [0], [0]>} : vector<8x8x8xbf16>, vector<8x8x8xbf16>, vector<8x8x8xf32> -> vector<8x8x8xf32>
    %cst_16 = arith.constant dense<0xFF800000> : vector<8x8xf32>
    %58 = vector.multi_reduction <maximumf>, %57, %cst_16 [2] : vector<8x8x8xf32> to vector<8x8xf32>
    %59 = vector.shape_cast %58 : vector<8x8xf32> to vector<8x8x1xf32>
    %60 = vector.broadcast %59 : vector<8x8x1xf32> to vector<8x8x8xf32>
    %61 = arith.subf %57, %60 : vector<8x8x8xf32>
    %62 = math.exp %61 : vector<8x8x8xf32>
    %cst_17 = arith.constant dense<0.000000e+00> : vector<8x8xf32>
    %63 = vector.multi_reduction <add>, %62, %cst_17 [2] : vector<8x8x8xf32> to vector<8x8xf32>
    %64 = vector.shape_cast %63 : vector<8x8xf32> to vector<8x8x1xf32>
    %65 = arith.truncf %62 : vector<8x8x8xf32> to vector<8x8x8xbf16>
    %cst_18 = arith.constant dense<0.000000e+00> : vector<8x8x8xf32>
    %66 = tpu.matmul %65, %56, %cst_18 {dimension_numbers = #tpu.dot_dimension_numbers<[2], [1], [1], [2], [0, 0, 0, 1, 1, 2], [0], [0]>} : vector<8x8x8xbf16>, vector<8x8x8xbf16>, vector<8x8x8xf32> -> vector<8x8x8xf32>
    %67 = tpu.reciprocal %64 {approx = true} : vector<8x8x1xf32> -> vector<8x8x1xf32>
    %68 = vector.broadcast %67 : vector<8x8x1xf32> to vector<8x8x8xf32>
    %69 = arith.mulf %66, %68 : vector<8x8x8xf32>
    %70 = vector.extract_strided_slice %69 {offsets = [0, 0, 0], sizes = [2, 8, 8], strides = [1, 1, 1]} : vector<8x8x8xf32> to vector<2x8x8xf32>
    %71 = vector.extract_strided_slice %69 {offsets = [2, 0, 0], sizes = [2, 8, 8], strides = [1, 1, 1]} : vector<8x8x8xf32> to vector<2x8x8xf32>
    %72 = vector.extract_strided_slice %69 {offsets = [4, 0, 0], sizes = [2, 8, 8], strides = [1, 1, 1]} : vector<8x8x8xf32> to vector<2x8x8xf32>
    %73 = vector.extract_strided_slice %69 {offsets = [6, 0, 0], sizes = [2, 8, 8], strides = [1, 1, 1]} : vector<8x8x8xf32> to vector<2x8x8xf32>
    %74 = tpu.concatenate %70, %71, %72, %73 in 2 : vector<2x8x8xf32>, vector<2x8x8xf32>, vector<2x8x8xf32>, vector<2x8x8xf32> -> vector<2x8x32xf32>
    %75 = vector.shape_cast %74 : vector<2x8x32xf32> to vector<16x32xf32>
    %76 = arith.truncf %75 : vector<16x32xf32> to vector<16x32xbf16>
    %77 = arith.index_cast %arg1 : i32 to index
    %c0_19 = arith.constant 0 : index
    %c0_20 = arith.constant 0 : index
    %78 = vector.load %arg7[%77, %c0_19, %c0_20] : memref<2x32x32xbf16, #tpu.memory_space<vmem>>, vector<1x32x32xbf16>
    %79 = vector.shape_cast %78 : vector<1x32x32xbf16> to vector<32x32xbf16>
    %cst_21 = arith.constant dense<0.000000e+00> : vector<16x32xf32>
    %80 = tpu.matmul %76, %79, %cst_21 {dimension_numbers = #tpu.dot_dimension_numbers<[1], [0], [0], [1], [0, 0, 1, 1], [], []>} : vector<16x32xbf16>, vector<32x32xbf16>, vector<16x32xf32> -> vector<16x32xf32>
    %81 = arith.index_cast %arg1 : i32 to index
    %c0_22 = arith.constant 0 : index
    %c0_23 = arith.constant 0 : index
    %82 = vector.load %arg8[%81, %c0_22, %c0_23] : memref<2x1x32xf32, #tpu.memory_space<vmem>>, vector<1x1x32xf32>
    %83 = vector.shape_cast %82 : vector<1x1x32xf32> to vector<1x32xf32>
    %84 = vector.broadcast %83 : vector<1x32xf32> to vector<16x32xf32>
    %85 = arith.addf %80, %84 : vector<16x32xf32>
    %86 = arith.addf %85, %3 : vector<16x32xf32>
    %87 = arith.index_cast %arg1 : i32 to index
    %c0_24 = arith.constant 0 : index
    %c0_25 = arith.constant 0 : index
    %88 = vector.load %arg9[%87, %c0_24, %c0_25] : memref<2x1x32xf32, #tpu.memory_space<vmem>>, vector<1x1x32xf32>
    %89 = vector.shape_cast %88 : vector<1x1x32xf32> to vector<1x32xf32>
    %90 = arith.index_cast %arg1 : i32 to index
    %c0_26 = arith.constant 0 : index
    %c0_27 = arith.constant 0 : index
    %91 = vector.load %arg10[%90, %c0_26, %c0_27] : memref<2x1x32xf32, #tpu.memory_space<vmem>>, vector<1x1x32xf32>
    %92 = vector.shape_cast %91 : vector<1x1x32xf32> to vector<1x32xf32>
    %cst_28 = arith.constant dense<0.000000e+00> : vector<16xf32>
    %93 = vector.multi_reduction <add>, %86, %cst_28 [1] : vector<16x32xf32> to vector<16xf32>
    %94 = vector.shape_cast %93 : vector<16xf32> to vector<16x1xf32>
    %cst_29 = arith.constant 3.200000e+01 : f32
    %95 = vector.broadcast %cst_29 : f32 to vector<16x1xf32>
    %96 = arith.divf %94, %95 : vector<16x1xf32>
    %97 = vector.broadcast %96 : vector<16x1xf32> to vector<16x32xf32>
    %98 = arith.subf %86, %97 : vector<16x32xf32>
    %99 = arith.mulf %98, %98 : vector<16x32xf32>
    %cst_30 = arith.constant dense<0.000000e+00> : vector<16xf32>
    %100 = vector.multi_reduction <add>, %99, %cst_30 [1] : vector<16x32xf32> to vector<16xf32>
    %101 = vector.shape_cast %100 : vector<16xf32> to vector<16x1xf32>
    %cst_31 = arith.constant 3.200000e+01 : f32
    %102 = vector.broadcast %cst_31 : f32 to vector<16x1xf32>
    %103 = arith.divf %101, %102 : vector<16x1xf32>
    %cst_32 = arith.constant 9.99999974E-6 : f32
    %104 = vector.broadcast %cst_32 : f32 to vector<16x1xf32>
    %105 = arith.addf %103, %104 : vector<16x1xf32>
    %106 = math.rsqrt %105 : vector<16x1xf32>
    %107 = vector.broadcast %106 : vector<16x1xf32> to vector<16x32xf32>
    %108 = arith.mulf %98, %107 : vector<16x32xf32>
    %109 = vector.broadcast %89 : vector<1x32xf32> to vector<16x32xf32>
    %110 = arith.mulf %108, %109 : vector<16x32xf32>
    %111 = vector.broadcast %92 : vector<1x32xf32> to vector<16x32xf32>
    %112 = arith.addf %110, %111 : vector<16x32xf32>
    %113 = arith.truncf %112 : vector<16x32xf32> to vector<16x32xbf16>
    %114 = arith.index_cast %arg1 : i32 to index
    %c0_33 = arith.constant 0 : index
    %c0_34 = arith.constant 0 : index
    %115 = vector.load %arg11[%114, %c0_33, %c0_34] : memref<2x32x128xbf16, #tpu.memory_space<vmem>>, vector<1x32x128xbf16>
    %116 = vector.shape_cast %115 : vector<1x32x128xbf16> to vector<32x128xbf16>
    %cst_35 = arith.constant dense<0.000000e+00> : vector<16x128xf32>
    %117 = tpu.matmul %113, %116, %cst_35 {dimension_numbers = #tpu.dot_dimension_numbers<[1], [0], [0], [1], [0, 0, 1, 1], [], []>} : vector<16x32xbf16>, vector<32x128xbf16>, vector<16x128xf32> -> vector<16x128xf32>
    %118 = arith.index_cast %arg1 : i32 to index
    %c0_36 = arith.constant 0 : index
    %c0_37 = arith.constant 0 : index
    %119 = vector.load %arg12[%118, %c0_36, %c0_37] : memref<2x1x128xf32, #tpu.memory_space<vmem>>, vector<1x1x128xf32>
    %120 = vector.shape_cast %119 : vector<1x1x128xf32> to vector<1x128xf32>
    %121 = vector.broadcast %120 : vector<1x128xf32> to vector<16x128xf32>
    %122 = arith.addf %117, %121 : vector<16x128xf32>
    %cst_38 = arith.constant 0.000000e+00 : f32
    %123 = vector.broadcast %cst_38 : f32 to vector<16x128xf32>
    %124 = arith.maximumf %122, %123 : vector<16x128xf32>
    %cst_39 = arith.constant 0.000000e+00 : f32
    %125 = vector.broadcast %cst_39 : f32 to vector<16x128xf32>
    %126 = arith.cmpf oeq, %124, %125 : vector<16x128xf32>
    %127 = arith.extui %126 : vector<16x128xi1> to vector<16x128xi32>
    %128 = arith.sitofp %127 : vector<16x128xi32> to vector<16x128xf32>
    %cst_40 = arith.constant dense<0.000000e+00> : vector<16xf32>
    %129 = vector.multi_reduction <add>, %128, %cst_40 [1] : vector<16x128xf32> to vector<16xf32>
    %130 = vector.shape_cast %129 : vector<16xf32> to vector<16x1xf32>
    %cst_41 = arith.constant 1.280000e+02 : f32
    %131 = vector.broadcast %cst_41 : f32 to vector<16x1xf32>
    %132 = arith.divf %130, %131 : vector<16x1xf32>
    %cst_42 = arith.constant dense<0.000000e+00> : vector<1xf32>
    %133 = vector.multi_reduction <add>, %132, %cst_42 [0] : vector<16x1xf32> to vector<1xf32>
    %134 = vector.shape_cast %133 : vector<1xf32> to vector<1x1xf32>
    %cst_43 = arith.constant 1.600000e+01 : f32
    %135 = vector.broadcast %cst_43 : f32 to vector<1x1xf32>
    %136 = arith.divf %134, %135 : vector<1x1xf32>
    %137 = tpu.iota {dimensions = array<i32: 2>} : vector<1x1x2xi32>
    %138 = vector.broadcast %arg1 : i32 to vector<1x1x2xi32>
    %139 = arith.cmpi eq, %137, %138 : vector<1x1x2xi32>
    %c0_44 = arith.constant 0 : index
    %c0_45 = arith.constant 0 : index
    %c0_46 = arith.constant 0 : index
    %140 = vector.load %arg18[%c0_44, %c0_45, %c0_46] : memref<1x1x2xf32, #tpu.memory_space<vmem>>, vector<1x1x2xf32>
    %141 = vector.shape_cast %136 : vector<1x1xf32> to vector<1x1x1xf32>
    %142 = vector.broadcast %141 : vector<1x1x1xf32> to vector<1x1x2xf32>
    %143 = arith.select %139, %142, %140 : vector<1x1x2xi1>, vector<1x1x2xf32>
    %c0_47 = arith.constant 0 : index
    %c0_48 = arith.constant 0 : index
    %c0_49 = arith.constant 0 : index
    %144 = vector.load %arg18[%c0_47, %c0_48, %c0_49] : memref<1x1x2xf32, #tpu.memory_space<vmem>>, vector<1x1x2xf32>
    tpu.vector_store %arg18[%c0_47, %c0_48, %c0_49], %143 {strides = array<i32>} : memref<1x1x2xf32, #tpu.memory_space<vmem>>, vector<1x1x2xf32>,
    %145 = arith.truncf %124 : vector<16x128xf32> to vector<16x128xbf16>
    %146 = arith.index_cast %arg1 : i32 to index
    %c0_50 = arith.constant 0 : index
    %c0_51 = arith.constant 0 : index
    %147 = vector.load %arg13[%146, %c0_50, %c0_51] : memref<2x128x32xbf16, #tpu.memory_space<vmem>>, vector<1x128x32xbf16>
    %148 = vector.shape_cast %147 : vector<1x128x32xbf16> to vector<128x32xbf16>
    %cst_52 = arith.constant dense<0.000000e+00> : vector<16x32xf32>
    %149 = tpu.matmul %145, %148, %cst_52 {dimension_numbers = #tpu.dot_dimension_numbers<[1], [0], [0], [1], [0, 0, 1, 1], [], []>} : vector<16x128xbf16>, vector<128x32xbf16>, vector<16x32xf32> -> vector<16x32xf32>
    %150 = arith.index_cast %arg1 : i32 to index
    %c0_53 = arith.constant 0 : index
    %c0_54 = arith.constant 0 : index
    %151 = vector.load %arg14[%150, %c0_53, %c0_54] : memref<2x1x32xf32, #tpu.memory_space<vmem>>, vector<1x1x32xf32>
    %152 = vector.shape_cast %151 : vector<1x1x32xf32> to vector<1x32xf32>
    %153 = vector.broadcast %152 : vector<1x32xf32> to vector<16x32xf32>
    %154 = arith.addf %149, %153 : vector<16x32xf32>
    %155 = arith.addf %154, %86 : vector<16x32xf32>
    %c0_55 = arith.constant 0 : index
    %c0_56 = arith.constant 0 : index
    %156 = vector.load %arg19[%c0_55, %c0_56] : memref<16x32xf32, #tpu.memory_space<vmem>>, vector<16x32xf32>
    tpu.vector_store %arg19[%c0_55, %c0_56], %155 {strides = array<i32>} : memref<16x32xf32, #tpu.memory_space<vmem>>, vector<16x32xf32>,
    %c1_i32 = arith.constant 1 : i32
    %157 = arith.cmpi eq, %arg1, %c1_i32 : i32
    %158 = arith.extui %157 : i1 to i32
    %c0_i32_57 = arith.constant 0 : i32
    %159 = arith.cmpi ne, %158, %c0_i32_57 : i32
    scf.if %159 {
      %c0_58 = arith.constant 0 : index
      %c0_59 = arith.constant 0 : index
      %160 = vector.load %arg15[%c0_58, %c0_59] : memref<1x32xf32, #tpu.memory_space<vmem>>, vector<1x32xf32>
      %c0_60 = arith.constant 0 : index
      %c0_61 = arith.constant 0 : index
      %161 = vector.load %arg16[%c0_60, %c0_61] : memref<1x32xf32, #tpu.memory_space<vmem>>, vector<1x32xf32>
      %cst_62 = arith.constant dense<0.000000e+00> : vector<16xf32>
      %162 = vector.multi_reduction <add>, %155, %cst_62 [1] : vector<16x32xf32> to vector<16xf32>
      %163 = vector.shape_cast %162 : vector<16xf32> to vector<16x1xf32>
      %cst_63 = arith.constant 3.200000e+01 : f32
      %164 = vector.broadcast %cst_63 : f32 to vector<16x1xf32>
      %165 = arith.divf %163, %164 : vector<16x1xf32>
      %166 = vector.broadcast %165 : vector<16x1xf32> to vector<16x32xf32>
      %167 = arith.subf %155, %166 : vector<16x32xf32>
      %168 = arith.mulf %167, %167 : vector<16x32xf32>
      %cst_64 = arith.constant dense<0.000000e+00> : vector<16xf32>
      %169 = vector.multi_reduction <add>, %168, %cst_64 [1] : vector<16x32xf32> to vector<16xf32>
      %170 = vector.shape_cast %169 : vector<16xf32> to vector<16x1xf32>
      %cst_65 = arith.constant 3.200000e+01 : f32
      %171 = vector.broadcast %cst_65 : f32 to vector<16x1xf32>
      %172 = arith.divf %170, %171 : vector<16x1xf32>
      %cst_66 = arith.constant 9.99999974E-6 : f32
      %173 = vector.broadcast %cst_66 : f32 to vector<16x1xf32>
      %174 = arith.addf %172, %173 : vector<16x1xf32>
      %175 = math.rsqrt %174 : vector<16x1xf32>
      %176 = vector.broadcast %175 : vector<16x1xf32> to vector<16x32xf32>
      %177 = arith.mulf %167, %176 : vector<16x32xf32>
      %178 = vector.broadcast %160 : vector<1x32xf32> to vector<16x32xf32>
      %179 = arith.mulf %177, %178 : vector<16x32xf32>
      %180 = vector.broadcast %161 : vector<1x32xf32> to vector<16x32xf32>
      %181 = arith.addf %179, %180 : vector<16x32xf32>
      %182 = vector.shape_cast %181 : vector<16x32xf32> to vector<2x8x32xf32>
      %c0_67 = arith.constant 0 : index
      %c0_68 = arith.constant 0 : index
      %c0_69 = arith.constant 0 : index
      %183 = vector.load %arg17[%c0_67, %c0_68, %c0_69] : memref<2x8x32xf32, #tpu.memory_space<vmem>>, vector<2x8x32xf32>
      tpu.vector_store %arg17[%c0_67, %c0_68, %c0_69], %182 {strides = array<i32>} : memref<2x8x32xf32, #tpu.memory_space<vmem>>, vector<2x8x32xf32>,
    } else {
    }
    return
  }
  func.func @transform_0(%arg0: i32, %arg1: i32) -> (i32, i32, i32) {
    %c0_i32 = arith.constant 0 : i32
    %c0_i32_0 = arith.constant 0 : i32
    %c0_i32_1 = arith.constant 0 : i32
    return %arg0, %c0_i32, %c0_i32_0 : i32, i32, i32
  }
  func.func @transform_1(%arg0: i32, %arg1: i32) -> (i32, i32, i32) {
    %c0_i32 = arith.constant 0 : i32
    %c0_i32_0 = arith.constant 0 : i32
    %c0_i32_1 = arith.constant 0 : i32
    %c0_i32_2 = arith.constant 0 : i32
    return %c0_i32, %c0_i32_0, %c0_i32_1 : i32, i32, i32
  }
  func.func @transform_2(%arg0: i32, %arg1: i32) -> (i32, i32, i32) {
    %c0_i32 = arith.constant 0 : i32
    %c0_i32_0 = arith.constant 0 : i32
    %c0_i32_1 = arith.constant 0 : i32
    %c0_i32_2 = arith.constant 0 : i32
    return %c0_i32, %c0_i32_0, %c0_i32_1 : i32, i32, i32
  }
  func.func @transform_3(%arg0: i32, %arg1: i32) -> (i32, i32, i32) {
    %c0_i32 = arith.constant 0 : i32
    %c0_i32_0 = arith.constant 0 : i32
    %c0_i32_1 = arith.constant 0 : i32
    %c0_i32_2 = arith.constant 0 : i32
    return %c0_i32, %c0_i32_0, %c0_i32_1 : i32, i32, i32
  }
  func.func @transform_4(%arg0: i32, %arg1: i32) -> (i32, i32, i32) {
    %c0_i32 = arith.constant 0 : i32
    %c0_i32_0 = arith.constant 0 : i32
    %c0_i32_1 = arith.constant 0 : i32
    %c0_i32_2 = arith.constant 0 : i32
    return %c0_i32, %c0_i32_0, %c0_i32_1 : i32, i32, i32
  }
  func.func @transform_5(%arg0: i32, %arg1: i32) -> (i32, i32, i32) {
    %c0_i32 = arith.constant 0 : i32
    %c0_i32_0 = arith.constant 0 : i32
    %c0_i32_1 = arith.constant 0 : i32
    %c0_i32_2 = arith.constant 0 : i32
    return %c0_i32, %c0_i32_0, %c0_i32_1 : i32, i32, i32
  }
  func.func @transform_6(%arg0: i32, %arg1: i32) -> (i32, i32, i32) {
    %c0_i32 = arith.constant 0 : i32
    %c0_i32_0 = arith.constant 0 : i32
    %c0_i32_1 = arith.constant 0 : i32
    %c0_i32_2 = arith.constant 0 : i32
    return %c0_i32, %c0_i32_0, %c0_i32_1 : i32, i32, i32
  }
  func.func @transform_7(%arg0: i32, %arg1: i32) -> (i32, i32, i32) {
    %c0_i32 = arith.constant 0 : i32
    %c0_i32_0 = arith.constant 0 : i32
    %c0_i32_1 = arith.constant 0 : i32
    %c0_i32_2 = arith.constant 0 : i32
    return %c0_i32, %c0_i32_0, %c0_i32_1 : i32, i32, i32
  }
  func.func @transform_8(%arg0: i32, %arg1: i32) -> (i32, i32, i32) {
    %c0_i32 = arith.constant 0 : i32
    %c0_i32_0 = arith.constant 0 : i32
    %c0_i32_1 = arith.constant 0 : i32
    %c0_i32_2 = arith.constant 0 : i32
    return %c0_i32, %c0_i32_0, %c0_i32_1 : i32, i32, i32
  }
  func.func @transform_9(%arg0: i32, %arg1: i32) -> (i32, i32, i32) {
    %c0_i32 = arith.constant 0 : i32
    %c0_i32_0 = arith.constant 0 : i32
    %c0_i32_1 = arith.constant 0 : i32
    %c0_i32_2 = arith.constant 0 : i32
    return %c0_i32, %c0_i32_0, %c0_i32_1 : i32, i32, i32
  }
  func.func @transform_10(%arg0: i32, %arg1: i32) -> (i32, i32, i32) {
    %c0_i32 = arith.constant 0 : i32
    %c0_i32_0 = arith.constant 0 : i32
    %c0_i32_1 = arith.constant 0 : i32
    %c0_i32_2 = arith.constant 0 : i32
    return %c0_i32, %c0_i32_0, %c0_i32_1 : i32, i32, i32
  }
  func.func @transform_11(%arg0: i32, %arg1: i32) -> (i32, i32, i32) {
    %c0_i32 = arith.constant 0 : i32
    %c0_i32_0 = arith.constant 0 : i32
    %c0_i32_1 = arith.constant 0 : i32
    %c0_i32_2 = arith.constant 0 : i32
    return %c0_i32, %c0_i32_0, %c0_i32_1 : i32, i32, i32
  }
  func.func @transform_12(%arg0: i32, %arg1: i32) -> (i32, i32, i32) {
    %c0_i32 = arith.constant 0 : i32
    %c0_i32_0 = arith.constant 0 : i32
    %c0_i32_1 = arith.constant 0 : i32
    %c0_i32_2 = arith.constant 0 : i32
    return %c0_i32, %c0_i32_0, %c0_i32_1 : i32, i32, i32
  }
  func.func @transform_13(%arg0: i32, %arg1: i32) -> (i32, i32) {
    %c0_i32 = arith.constant 0 : i32
    %c0_i32_0 = arith.constant 0 : i32
    %c0_i32_1 = arith.constant 0 : i32
    return %c0_i32, %c0_i32_0 : i32, i32
  }
  func.func @transform_14(%arg0: i32, %arg1: i32) -> (i32, i32) {
    %c0_i32 = arith.constant 0 : i32
    %c0_i32_0 = arith.constant 0 : i32
    %c0_i32_1 = arith.constant 0 : i32
    return %c0_i32, %c0_i32_0 : i32, i32
  }
  func.func @transform_15(%arg0: i32, %arg1: i32) -> (i32, i32, i32) {
    %c0_i32 = arith.constant 0 : i32
    %c0_i32_0 = arith.constant 0 : i32
    %c0_i32_1 = arith.constant 0 : i32
    return %arg0, %c0_i32, %c0_i32_0 : i32, i32, i32
  }
  func.func @transform_16(%arg0: i32, %arg1: i32) -> (i32, i32, i32) {
    %c0_i32 = arith.constant 0 : i32
    %c0_i32_0 = arith.constant 0 : i32
    %c0_i32_1 = arith.constant 0 : i32
    return %arg0, %c0_i32, %c0_i32_0 : i32, i32, i32
  }
}

</mosaic_0001>

<bundles_post_ra>
// kernel: tpu_custom_call.1
= control target key start
LH: loop header
LB: loop body
LE: loop exit
PB: predicated region body
PF: predicated region fallthrough
CT: control target
= control target key end

     0   :  { %s3285_s0 = inlined_call_operand.vmem [shape: f32[4,8,32], index: 0, kind: input, shape index: {}]   ;;  %s3286_s1 = inlined_call_operand.vmem [shape: f32[2,1,32], index: 1, kind: input, shape index: {}]   ;;  %s3287_s2 = inlined_call_operand.vmem [shape: f32[2,1,32], index: 2, kind: input, shape index: {}]   ;;  %s3288_s3 = inlined_call_operand.vmem [shape: bf16[2,32,96], index: 3, kind: input, shape index: {}]   ;;  %s3289_s4 = inlined_call_operand.vmem [shape: f32[2,1,96], index: 4, kind: input, shape index: {}]   ;;  %s3290_s5 = inlined_call_operand.vmem [shape: bf16[2,32,32], index: 5, kind: input, shape index: {}]   ;;  %s3291_s6 = inlined_call_operand.vmem [shape: f32[2,1,32], index: 6, kind: input, shape index: {}]   ;;  %s3292_s7 = inlined_call_operand.vmem [shape: f32[2,1,32], index: 7, kind: input, shape index: {}]   ;;  %s3293_s8 = inlined_call_operand.vmem [shape: f32[2,1,32], index: 8, kind: input, shape index: {}]   ;;  %s3294_s9 = inlined_call_operand.vmem [shape: bf16[2,32,128], index: 9, kind: input, shape index: {}]   ;;  %s3295_s10 = inlined_call_operand.vmem [shape: f32[2,1,128], index: 10, kind: input, shape index: {}]   ;;  %s3296_s11 = inlined_call_operand.vmem [shape: bf16[2,128,32], index: 11, kind: input, shape index: {}]   ;;  %s3297_s12 = inlined_call_operand.vmem [shape: f32[2,1,32], index: 12, kind: input, shape index: {}]   ;;  %s3298_s13 = inlined_call_operand.vmem [shape: f32[1,32], index: 13, kind: input, shape index: {}]   ;;  %s3299_s14 = inlined_call_operand.vmem [shape: f32[1,32], index: 14, kind: input, shape index: {}]   ;;  %s3300_s15 = inlined_call_operand.hbm [shape: f32[4,8,32], index: 15, kind: output, shape index: {0}]   ;;  %s3301_s16 = inlined_call_operand.hbm [shape: f32[2,1,2], index: 16, kind: output, shape index: {1}]  }
   0x1   :  { %3313 = sst [smem:[#allocation18_spill]] %s3285_s0 }
   0x2   :  { %3314 = sst [smem:[#allocation19_spill]] %s3286_s1 }
   0x3   :  { %3315 = sst [smem:[#allocation20_spill]] %s3287_s2 }
   0x4   :  { %3316 = sst [smem:[#allocation21_spill]] %s3288_s3 }
   0x5   :  { %3317 = sst [smem:[#allocation22_spill]] %s3289_s4 }
   0x6   :  { %3318 = sst [smem:[#allocation23_spill]] %s3290_s5 }
   0x7   :  { %3319 = sst [smem:[#allocation24_spill]] %s3291_s6 }
   0x8   :  { %3320 = sst [smem:[#allocation25_spill]] %s3300_s15 }
   0x9   :  { %3321 = sst [smem:[#allocation26_spill]] %s3301_s16 }
   0xa   :  { %22 = vsyncpa [#allocation4], 0 }
   0xb   :  { %24 = vsyncpa [#allocation4 + $0x1], 0 }
   0xc   :  { %25 = vsyncpa [#allocation6], 0 }
   0xd   :  { %27 = vsyncpa [#allocation6 + $0x1], 0  ;;  %s2808_s21 = smov 0   ;;  %s2810_s22 = smov 0  }
   0xe   :  { %s2812_s23 = smov 0   ;;  %s2814_s24 = smov 0  }
   0xf   :  { %s2816_s25 = smov 0   ;;  %s2818_s26 = smov 0  }
  0x10   :  { %s2820_s27 = smov 0   ;;  %s2822_s28 = smov 0  }
  0x11 LB: > { %3322 = sst [smem:[#allocation9_spill]] %s2679_s21  ;;  %s2148_s29 = sadd.s32 4294967295, %s2707_s28   ;;  %s2707_s28 = sphi %s2822_s28, %s33_s28   ;;  %s2703_s27 = sphi %s2820_s27, %s3352_s27   ;;  %s2699_s26 = sphi %s2818_s26, %s3351_s26   ;;  %s2695_s25 = sphi %s2816_s25, %s3350_s25   ;;  %s2691_s24 = sphi %s2814_s24, %s3349_s24   ;;  %s2687_s23 = sphi %s2812_s23, %s3348_s23   ;;  %s2683_s22 = sphi %s2810_s22, %s3354_s22   ;;  %s2679_s21 = sphi %s2808_s21, %s3353_s21  }
  0x12   : > { %3323 = sst [smem:[#allocation10_spill]] %s2687_s23  ;;  %s2149_s30 = sadd.s32 4294967294, %s2707_s28  }
  0x13   : > { %3324 = sst [smem:[#allocation11_spill]] %s2699_s26  ;;  %s42_s0 = sadd.s32 1, %s2699_s26 }
  0x14   : > { %3325 = sst [smem:[#allocation12_spill]] %s2703_s27  ;;  %p43_p0 = scmp.ge.s32.totalorder %s42_s0, 2 }
  0x15   : > { %3326 = sst [smem:[#allocation13_spill]] %s2707_s28  ;;  %s45_s17 = sadd.s32 1, %s2703_s27 }
  0x16   : > { %p382_p1 = scmp.ne.s32.totalorder %s2687_s23, %s2683_s22  ;;  %p383_p2 = scmp.eq.s32.totalorder %s2148_s29, 3 }
  0x17   : > { %s3356_s0 = smov (%p43_p0, %s42_s0), 0  ;;  %s3358_s17 = smov (!%p43_p0, %s45_s17), %s2703_s27 }
  0x18   : > { %3327 = sst [smem:[#allocation14_spill]] %s3356_s0  ;;  %p2857_p3 = por %p383_p2, %p382_p1 }
  0x19   : > { %p388_p4 = scmp.ne.s32.totalorder %s2683_s22, %s2679_s21  ;;  %p47_p5 = scmp.ge.s32.totalorder %s3358_s17, 2 }
  0x1a   : > { %p389_p6 = scmp.eq.s32.totalorder %s2149_s30, 3  ;;  %p2152_p7 = scmp.ge.s32.totalorder %s2707_s28, 1 }
  0x1b   : > { %p484_p8 = scmp.lt.s32.totalorder %s2707_s28, 5  ;;  %s3360_s17 = smov (%p47_p5, %s3358_s17), 0 }
  0x1c   : > { %3329 = sst [smem:[#allocation15_spill]] %s3360_s17  ;;  %p2867_p9 = por %p389_p6, %p388_p4 }
  0x1d   : > { %p485_p10 = pnand %p2152_p7, %p484_p8  ;;  %s369_s20 = ssub.s32 %s2703_s27, %s3360_s17 }
  0x1e   : > { %s3330_s19 = scalar_select %p2867_p9, 1, 0 }
  0x1f   : > { %s372_s29 = sadd.s32 1, %s2687_s23  ;;  %p370_p11 = scmp.eq.s32.totalorder %s369_s20, 0 }
  0x20   : > { %3331 = sst [smem:[#allocation16_spill]] %s3330_s19  ;;  %488 = sbr.rel (%p485_p10) target bundleno = 2938 (0xb7a), region = 80 }
  0x21   : > { %s2875_s0 = scalar_select %p370_p11, %s2687_s23, %s372_s29  }
  0x22   : > { %s2878_s26 = sand.u32 (!%p485_p10), 1, %s2683_s22   ;;  %s2154_s30 = sshll.u32 (!%p485_p10), %s2695_s25, 1 }
  0x23   : > { %3332 = sst [smem:[#allocation17_spill]] %s2875_s0  ;;  %s2153_s21 = sshll.u32 (!%p485_p10), %s2878_s26, 4 }
  0x24   : > { %p539_p12 = scmp.lt.s32.totalorder (!%p485_p10), %s2154_s30, 3  ;;  %s3333_s15 = sld [smem:[#allocation18_spill]] (!%p485_p10) }
  0x25   : > { %s2885_s27 = scalar_lea.vmem (!%p485_p10), [#allocation3], %s2153_s21  ;;  %s2888_s20 = scalar_lea.vmem (!%p485_p10), [#allocation5], %s2878_s26 }
  0x26   : > { %p2156_p13 = scmp.ne.s32.totalorder (!%p485_p10), %s2691_s24, 0 }
  0x27   : > { %s3362_s30 = smov (!%p539_p12, %s2154_s30), 3  ;;  %vm552_vm0 = vcmask (!%p2156_p13), 261120   ;;  %vm555_vm1 = vcmask (!%p2156_p13), 8192   ;;  %v2709_v2 = vmov (!%p2156_p13), 0.0  }
  0x28   : > { %s2155_s28 = sshll.u32 %s3362_s30, 3  ;;  %549 = sbr.rel (%p2156_p13) target bundleno = 47 (0x2f), region = 84  ;;  %556 = vst.msk [vmem:[%s2888_s20] sm:$0x1] (!%p2156_p13), %vm555_vm1, %v2709_v2 }
  0x2a   : > { %s542_s17 = scalar_lea.vmem %s3333_s15, %s2155_s28 }
  0x2b   : > { %v550_v0 = vld [vmem:[%s542_s17] sm:$0xff] (!%p2156_p13)  ;;  %v551_v1 = vld [vmem:[%s542_s17 + $0x8] sm:$0xff] (!%p2156_p13) }
  0x2c   : > { %553 = vst.msk [vmem:[#allocation2] sm:$0xff] (!%p2156_p13), %vm552_vm0, %v550_v0  ;;  %554 = vst.msk [vmem:[#allocation2 + $0x8] sm:$0xff] (!%p2156_p13), %vm552_vm0, %v551_v1 }
  0x2f PF: > { %vm563_vm2 = vcmask 261120   ;;  %s2223_s15 = sshll.u32 %s2691_s24, 4  ;;  %s3334_s3 = sld [smem:[#allocation21_spill]]  ;;  %v2710_v18 = vmov 0.0   ;;  %vm2711_vm3 = vmmov 0   ;;  %vm699_vm4 = vcmask 64512  }
  0x30   : > { %2280 = vmatprep.subr.bf16.mxu0 %v2710_v18  ;;  %s3335_s5 = sld [smem:[#allocation23_spill]]  ;;  %2300 = vmatprep.subr.bf16.mxu1 %v2710_v18  ;;  %s2918_s23 = scalar_lea.vmem %s3294_s9, %s2223_s15  ;;  %vm1179_vm5 = vcmask 1043456   ;;  %vm1601_vm6 = vcmask 130048   ;;  %vm1604_vm7 = vcmask 195584   ;;  %vm1827_vm11 = vcmask 8192  }
  0x31   : > { %2284 = vmatprep.mubr.msk.bf16.mxu0 %vm2711_vm3, %v2710_v18  ;;  %2302 = vmatprep.mubr.msk.bf16.mxu1 %vm2711_vm3, %v2710_v18  ;;  %s3336_s1 = sld [smem:[#allocation19_spill]]  ;;  %s3337_s2 = sld [smem:[#allocation20_spill]] }
  0x32   : > { %s3338_s4 = sld [smem:[#allocation22_spill]]  ;;  %s2714_s21 = smov 112  }
  0x33   : > { %v2892_v3 = vld [vmem:[#allocation2] sm:$0xff]  ;;  %v2894_v4 = vld [vmem:[#allocation2 + $0x8] sm:$0xff]  ;;  %s3312_s19 = smov 8   ;;  %s2718_s30 = smov 16  }
  0x34   : > { %v564_v5 = vsel %vm563_vm2, %v2892_v3, 0.0  ;;  %v567_v6 = vsel %vm563_vm2, %v2894_v4, 0.0  ;;  %s3339_s6 = sld [smem:[#allocation24_spill]]  ;;  %p2214_p0 = scmp.ne.s32.totalorder %s2691_s24, 1 }
  0x35   : > { %565 = vadd.xlane.f32.xlu0 %v564_v5  ;;  %s610_s28 = scalar_lea.vmem %s3334_s3, %s2223_s15 }
  0x36   : > { %v2523_v17 = vld [vmem:[%s610_s28] sm:$0xff]   ;;  %s2912_s29 = scalar_lea.vmem %s3335_s5, %s2223_s15  ;;  %v2524_v19 = vld [vmem:[%s610_s28 + $0x8] sm:$0xff]   ;;  %s2712_s15 = smov 120  }
  0x37   : > { %2281 = vmatpush3.bf16.msra.mxu0 %v2523_v17  ;;  %s559_s16 = scalar_lea.vmem %s3336_s1, %s2691_s24  ;;  %s561_s17 = scalar_lea.vmem %s3337_s2, %s2691_s24 }
  0x38   : > { %2282 = vmatprep.subr.bf16.mxu0 %v2710_v18  ;;  %v2157_v28 = vld [vmem:[%s559_s16] ss:$0 sm:$0xff]  ;;  %s615_s0 = scalar_lea.vmem %s3338_s4, %s2691_s24  ;;  %s2713_s16 = smov 104  }
  0x39   : > { %568 = vadd.xlane.f32.xlu0 %v567_v6  ;;  %v2158_v32 = vld [vmem:[%s561_s17] ss:$0 sm:$0xff]  ;;  %s2715_s28 = smov 96   ;;  %s2716_s17 = smov 64  }
  0x3a   : > { %v2161_v37 = vld [vmem:[%s615_s0] ss:$0 sm:$0xff]  ;;  %s2719_s0 = smov 24  }
  0x3b   : > { %2283 = vmatpush3.bf16.msra.mxu0 %v2524_v19 }
  0x3c   : > { %2288 = vmatprep.subr.bf16.mxu0 %v2710_v18 }
  0xc2   : > { %v566_v7 = vpop.xlane.xlu0 %565 }
  0xc3   : > { %v571_v8 = vmul.f32 0.03125, %v566_v7 }
  0xc5   : > { %v573_v9 = vsub.f32 %v2892_v3, %v571_v8 }
  0xc6   : > { %v569_v10 = vpop.xlane.xlu0 %568 }
  0xc7   : > { %v572_v11 = vmul.f32 0.03125, %v569_v10  ;;  %v575_v12 = vmul.f32 %v573_v9, %v573_v9 }
  0xc9   : > { %v574_v13 = vsub.f32 %v2894_v4, %v572_v11  ;;  %v577_v14 = vsel %vm563_vm2, %v575_v12, 0.0 }
  0xca   : > { %578 = vadd.xlane.f32.xlu1 %v577_v14 }
  0xcb   : > { %v576_v15 = vmul.f32 %v574_v13, %v574_v13 }
  0xcd   : > { %v580_v16 = vsel %vm563_vm2, %v576_v15, 0.0 }
  0xce   : > { %581 = vadd.xlane.f32.xlu1 %v580_v16 }
 0x157   : > { %v579_v20 = vpop.xlane.xlu1 %578 }
 0x158   : > { %v583_v21 = vmul.f32 0.03125, %v579_v20 }
 0x15a   : > { %v585_v22 = vadd.f32 1e-05, %v583_v21 }
 0x15b   : > { %v582_v23 = vpop.xlane.xlu1 %581 }
 0x15c   : > { %2537 = vrsqrt.f32 %v585_v22  ;;  %v584_v24 = vmul.f32 0.03125, %v582_v23 }
 0x15e   : > { %v586_v25 = vadd.f32 1e-05, %v584_v24 }
 0x160   : > { %2539 = vrsqrt.f32 %v586_v25 }
 0x166   : > { %v2538_v26 = vpop.eup %2537 }
 0x167   : > { %v589_v27 = vmul.f32 %v2538_v26, %v573_v9 }
 0x169   : > { %v597_v31 = vmul.f32 %v2157_v28, %v589_v27 }
 0x16a   : > { %v2540_v29 = vpop.eup %2539 }
 0x16b   : > { %v590_v30 = vmul.f32 %v2540_v29, %v574_v13  ;;  %v605_v34 = vadd.f32 %v2158_v32, %v597_v31 }
 0x16d   : > { %v598_v33 = vmul.f32 %v2157_v28, %v590_v30 }
 0x16f   : > { %v606_v35 = vadd.f32 %v2158_v32, %v598_v33 }
 0x171   : > { %v607_v36 = vpack.c.bf16 %v606_v35, %v605_v34 }
 0x173   : > { %2285 = vmatmul.mubr.msk.bf16.vlgmr.msra.gmra.mrb[0].mxu0 %vm563_vm2, %v607_v36 }
 0x174   : > { %2290 = vmatprep.mubr.msk.bf16.mxu0 %vm2711_vm3, %v2710_v18 }
 0x246   : > { %v672_v38 = vpop.f32.mrb[0].mxu0 }
 0x247   : > { %v673_v39 = vadd.f32 %v2161_v37, %v672_v38  ;;  %v2286_v40 = vpop.f32.mrb[1].mxu0 }
 0x248   : > { %v675_v41 = vpop.f32.mrb[2].mxu0 }
 0x249   : > { %v2224_v42 = vpack.c.bf16 %v673_v39, %v673_v39  ;;  %v676_v43 = vadd.f32 %v2161_v37, %v675_v41  ;;  %v2287_v44 = vpop.f32.mrb[3].mxu0 }
 0x24b   : > { %v2225_v45 = vpack.c.bf16 %v676_v43, %v676_v43  ;;  %685 = vrot.lane.b32.xlu0 %v2224_v42, %s2712_s15 }
 0x24d   : > { %687 = vrot.lane.b32.xlu1 %v2225_v45, %s2712_s15 }
 0x24f   : > { %693 = vrot.lane.b32.xlu0 %v2224_v42, %s2713_s16 }
 0x251   : > { %689 = vrot.lane.b32.xlu1 %v2224_v42, %s2714_s21 }
 0x253   : > { %697 = vrot.lane.b32.xlu0 %v2224_v42, %s2715_s28 }
 0x255   : > { %691 = vrot.lane.b32.xlu1 %v2225_v45, %s2714_s21  ;;  %s2228_s21 = sshll.u32 %s2691_s24, 6 }
 0x259   : > { %695 = vrot.lane.b32.xlu1 %v2225_v45, %s2713_s16  ;;  %s1614_s16 = scalar_lea.vmem %s3339_s6, %s2691_s24 }
 0x25d   : > { %746 = vrot.lane.b32.xlu1 %v2225_v45, %s2715_s28 }
 0x2bd   : > { %v686_v46 = vpop.permute.xlu0 %685 }
 0x2be   : > { %v2169_v47 = vcombine.low %v686_v46, %v686_v46 }
 0x2bf   : > { %v688_v48 = vpop.permute.xlu1 %687 }
 0x2c0   : > { %v2171_v49 = vcombine.low %v688_v48, %v688_v48  ;;  %796 = vrot.lane.b32.xlu0 %v2169_v47, %s2715_s28 }
 0x2c1   : > { %v2944_v50 = vpop.permute.xlu0 %693 }
 0x2c2   : > { %846 = vrot.lane.b32.xlu1 %v2171_v49, %s2715_s28  ;;  %v2954_v56 = vcombine.low %v2944_v50, %v2944_v50 }
 0x2c3   : > { %v690_v51 = vpop.permute.xlu1 %689 }
 0x2c4   : > { %v2947_v52 = vcombine.low %v690_v51, %v690_v51 }
 0x2c5   : > { %v698_v53 = vpop.permute.xlu0 %697 }
 0x2c6   : > { %v704_v54 = vsel %vm699_vm4, %v698_v53, 0  ;;  %896 = vrot.lane.b32.xlu0 %v2947_v52, %s2715_s28 }
 0x2c7   : > { %2289 = vmatpush3.bf16.xpose.msra.mxu0 %v704_v54  ;;  %v692_v55 = vpop.permute.xlu1 %691 }
 0x2c8   : > { %v2956_v57 = vcombine.low %v692_v55, %v692_v55  ;;  %2294 = vmatprep.subr.bf16.mxu0 %v2710_v18 }
 0x2ca   : > { %996 = vrot.lane.b32.xlu0 %v2954_v56, %s2715_s28  ;;  %946 = vrot.lane.b32.xlu1 %v2956_v57, %s2715_s28 }
 0x2cb   : > { %v696_v58 = vpop.permute.xlu1 %695 }
 0x2cc   : > { %v2963_v59 = vcombine.low %v696_v58, %v696_v58 }
 0x2ce   : > { %2291 = vmatmul.mubr.msk.bf16.vlgmr.msra.gmra.mrb[4].mxu0 %vm699_vm4, %v2224_v42  ;;  %1174 = vrot.lane.b32.xlu0 %v2224_v42, %s2716_s17 }
 0x2cf   : > { %1046 = vrot.lane.b32.xlu1 %v2963_v59, %s2715_s28  ;;  %v747_v60 = vpop.permute.xlu1 %746  ;;  %2296 = vmatprep.mubr.msk.bf16.mxu0 %vm2711_vm3, %v2710_v18 }
 0x2d0   : > { %v752_v61 = vsel %vm699_vm4, %v747_v60, 0 }
 0x2d1   : > { %2295 = vmatpush3.bf16.xpose.msra.mxu0 %v752_v61 }
 0x2d2   : > { %2306 = vmatprep.subr.bf16.mxu0 %v2710_v18 }
 0x2d3   : > { %1223 = vrot.lane.b32.xlu1 %v2225_v45, %s2716_s17 }
 0x2d7   : > { %1271 = vrot.lane.b32.xlu1 %v2169_v47, %s2716_s17 }
 0x2d8   : > { %2297 = vmatmul.mubr.msk.bf16.vlgmr.msra.gmra.mrb[8].mxu0 %vm699_vm4, %v2225_v45 }
 0x2d9   : > { %2308 = vmatprep.mubr.msk.bf16.mxu0 %vm2711_vm3, %v2710_v18 }
 0x2db   : > { %1319 = vrot.lane.b32.xlu1 %v2171_v49, %s2716_s17 }
 0x332   : > { %v797_v62 = vpop.permute.xlu0 %796 }
 0x333   : > { %v802_v63 = vsel %vm699_vm4, %v797_v62, 0 }
 0x334   : > { %2301 = vmatpush3.bf16.xpose.msra.mxu1 %v802_v63  ;;  %v847_v0 = vpop.permute.xlu1 %846 }
 0x335   : > { %v852_v1 = vsel %vm699_vm4, %v847_v0, 0  ;;  %2312 = vmatprep.subr.bf16.mxu1 %v2710_v18 }
 0x336   : > { %2307 = vmatpush3.bf16.xpose.msra.mxu0 %v852_v1 }
 0x337   : > { %2318 = vmatprep.subr.bf16.mxu0 %v2710_v18 }
 0x338   : > { %v897_v2 = vpop.permute.xlu0 %896 }
 0x339   : > { %v902_v5 = vsel %vm699_vm4, %v897_v2, 0 }
 0x33b   : > { %2303 = vmatmul.mubr.msk.bf16.vlgmr.msra.gmra.mrb[0].mxu1 %vm699_vm4, %v686_v46 }
 0x33c   : > { %2313 = vmatpush3.bf16.xpose.msra.mxu1 %v902_v5  ;;  %v947_v6 = vpop.permute.xlu1 %946  ;;  %2314 = vmatprep.mubr.msk.bf16.mxu1 %vm2711_vm3, %v2710_v18  ;;  %v997_v8 = vpop.permute.xlu0 %996 }
 0x33d   : > { %v952_v7 = vsel %vm699_vm4, %v947_v6, 0  ;;  %2309 = vmatmul.mubr.msk.bf16.vlgmr.msra.gmra.mrb[12].mxu0 %vm699_vm4, %v688_v48  ;;  %2324 = vmatprep.subr.bf16.mxu1 %v2710_v18  ;;  %v1002_v10 = vsel %vm699_vm4, %v997_v8, 0 }
 0x33e   : > { %2319 = vmatpush3.bf16.xpose.msra.mxu0 %v952_v7  ;;  %2320 = vmatprep.mubr.msk.bf16.mxu0 %vm2711_vm3, %v2710_v18 }
 0x33f   : > { %2330 = vmatprep.subr.bf16.mxu0 %v2710_v18 }
 0x340   : > { %v1175_v12 = vpop.permute.xlu0 %1174 }
 0x341   : > { %v1047_v9 = vpop.permute.xlu1 %1046  ;;  %v1181_v14 = vsel %vm1179_vm5, %v1175_v12, 0 }
 0x342   : > { %v1052_v11 = vsel %vm699_vm4, %v1047_v9, 0 }
 0x343   : > { %2315 = vmatmul.mubr.msk.bf16.vlgmr.msra.gmra.mrb[4].mxu1 %vm699_vm4, %v690_v51 }
 0x344   : > { %2325 = vmatpush3.bf16.xpose.msra.mxu1 %v1002_v10  ;;  %2326 = vmatprep.mubr.msk.bf16.mxu1 %vm2711_vm3, %v2710_v18 }
 0x345   : > { %2321 = vmatmul.mubr.msk.bf16.vlgmr.msra.gmra.mrb[16].mxu0 %vm699_vm4, %v692_v55  ;;  %2336 = vmatprep.subr.bf16.mxu1 %v2710_v18  ;;  %v1224_v13 = vpop.permute.xlu1 %1223 }
 0x346   : > { %2331 = vmatpush3.bf16.xpose.msra.mxu0 %v1052_v11  ;;  %2332 = vmatprep.mubr.msk.bf16.mxu0 %vm2711_vm3, %v2710_v18  ;;  %v1229_v15 = vsel %vm1179_vm5, %v1224_v13, 0 }
 0x347   : > { %2342 = vmatprep.subr.bf16.mxu0 %v2710_v18 }
 0x34b   : > { %2327 = vmatmul.mubr.msk.bf16.vlgmr.msra.gmra.mrb[8].mxu1 %vm699_vm4, %v2944_v50 }
 0x34c   : > { %2337 = vmatpush3.bf16.msra.mxu1 %v1181_v14  ;;  %2338 = vmatprep.mubr.msk.bf16.mxu1 %vm2711_vm3, %v2710_v18 }
 0x34d   : > { %2333 = vmatmul.mubr.msk.bf16.vlgmr.msra.gmra.mrb[20].mxu0 %vm699_vm4, %v696_v58  ;;  %2348 = vmatprep.subr.bf16.mxu1 %v2710_v18 }
 0x34e   : > { %2343 = vmatpush3.bf16.msra.mxu0 %v1229_v15  ;;  %2344 = vmatprep.mubr.msk.bf16.mxu0 %vm2711_vm3, %v2710_v18 }
 0x34f   : > { %2354 = vmatprep.subr.bf16.mxu0 %v2710_v18 }
 0x3a1   : > { %v740_v16 = vpop.f32.mrb[4].mxu0 }
 0x3a2   : > { %v2292_v17 = vpop.f32.mrb[5].mxu0  ;;  %v1094_v19 = vsel %vm699_vm4, %v740_v16, -inf }
 0x3a3   : > { %1095 = vmax.xlane.f32.xlu0 %v1094_v19  ;;  %v743_v20 = vpop.f32.mrb[6].mxu0 }
 0x3a4   : > { %v2293_v21 = vpop.f32.mrb[7].mxu0 }
 0x3ab   : > { %v788_v22 = vpop.f32.mrb[8].mxu0 }
 0x3ac   : > { %v2298_v23 = vpop.f32.mrb[9].mxu0  ;;  %v1097_v24 = vsel %vm699_vm4, %v788_v22, -inf }
 0x3ad   : > { %1098 = vmax.xlane.f32.xlu1 %v1097_v24  ;;  %v791_v25 = vpop.f32.mrb[10].mxu0 }
 0x3ae   : > { %v2299_v26 = vpop.f32.mrb[11].mxu0 }
 0x3be   : > { %1415 = vrot.lane.b32.xlu1 %v2956_v57, %s2716_s17  ;;  %v1272_v57 = vpop.permute.xlu1 %1271 }
 0x3c2   : > { %v1320_v62 = vpop.permute.xlu1 %1319 }
 0x3c3   : > { %v1325_v8 = vsel %vm1179_vm5, %v1320_v62, 0 }
 0x40e   : > { %v3018_v27 = vpop.f32.mrb[0].mxu1 }
 0x40f   : > { %v2304_v28 = vpop.f32.mrb[1].mxu1  ;;  %v1100_v29 = vsel %vm699_vm4, %v3018_v27, -inf }
 0x410   : > { %v841_v30 = vpop.f32.mrb[2].mxu1  ;;  %1101 = vmax.xlane.f32.xlu0 %v1100_v29  ;;  %v3022_v31 = vpop.f32.mrb[12].mxu0 }
 0x411   : > { %v2305_v32 = vpop.f32.mrb[3].mxu1  ;;  %v2310_v33 = vpop.f32.mrb[13].mxu0  ;;  %v1103_v36 = vsel %vm699_vm4, %v3022_v31, -inf }
 0x412   : > { %v891_v34 = vpop.f32.mrb[14].mxu0 }
 0x413   : > { %v2311_v35 = vpop.f32.mrb[15].mxu0 }
 0x414   : > { %1104 = vmax.xlane.f32.xlu0 %v1103_v36 }
 0x416   : > { %v3026_v37 = vpop.f32.mrb[4].mxu1 }
 0x417   : > { %v2316_v38 = vpop.f32.mrb[5].mxu1 }
 0x418   : > { %v941_v39 = vpop.f32.mrb[6].mxu1  ;;  %v988_v40 = vpop.f32.mrb[16].mxu0 }
 0x419   : > { %v2317_v41 = vpop.f32.mrb[7].mxu1  ;;  %v2322_v42 = vpop.f32.mrb[17].mxu0  ;;  %v1109_v43 = vsel %vm699_vm4, %v988_v40, -inf }
 0x41a   : > { %1110 = vmax.xlane.f32.xlu1 %v1109_v43  ;;  %v991_v44 = vpop.f32.mrb[18].mxu0 }
 0x41b   : > { %v2323_v45 = vpop.f32.mrb[19].mxu0 }
 0x41e   : > { %v3029_v46 = vpop.f32.mrb[8].mxu1 }
 0x41f   : > { %v2328_v47 = vpop.f32.mrb[9].mxu1  ;;  %v1112_v9 = vsel %vm699_vm4, %v3029_v46, -inf }
 0x420   : > { %v1041_v48 = vpop.f32.mrb[10].mxu1  ;;  %v3031_v49 = vpop.f32.mrb[20].mxu0 }
 0x421   : > { %v2329_v50 = vpop.f32.mrb[11].mxu1  ;;  %v2334_v51 = vpop.f32.mrb[21].mxu0  ;;  %v1115_v53 = vsel %vm699_vm4, %v3031_v49, -inf }
 0x422   : > { %1116 = vmax.xlane.f32.xlu1 %v1115_v53  ;;  %v1091_v54 = vpop.f32.mrb[22].mxu0 }
 0x423   : > { %v2335_v55 = vpop.f32.mrb[23].mxu0 }
 0x42a   : > { %1367 = vrot.lane.b32.xlu0 %v2947_v52, %s2716_s17  ;;  %v1277_v52 = vsel %vm1179_vm5, %v1272_v57, 0 }
 0x430   : > { %v1096_v58 = vpop.xlane.xlu0 %1095 }
 0x431   : > { %v1118_v60 = vsub.f32 %v740_v16, %v1096_v58 }
 0x433   : > { %v1126_v61 = vmul.f32 1.442695, %v1118_v60  ;;  %1511 = vrot.lane.b32.xlu1 %v2963_v59, %s2716_s17  ;;  %v1106_v59 = vsel %vm699_vm4, %v3026_v37, -inf }
 0x435   : > { %2541 = vpow2.f32 %v1126_v61 }
 0x43a   : > { %v1099_v63 = vpop.xlane.xlu1 %1098 }
 0x43b   : > { %v1119_v0 = vsub.f32 %v788_v22, %v1099_v63 }
 0x43d   : > { %v1128_v1 = vmul.f32 1.442695, %v1119_v0 }
 0x43e   : > { %v1416_v15 = vpop.permute.xlu1 %1415 }
 0x43f   : > { %v3039_v2 = vpop.eup %2541  ;;  %2543 = vpow2.f32 %v1128_v1 }
 0x440   : > { %v1166_v5 = vpack.c.bf16 %v3039_v2, %v3039_v2  ;;  %v1142_v57 = vsel %vm699_vm4, %v3039_v2, 0.0 }
 0x442   : > { %2339 = vmatmul.mubr.msk.bf16.vlgmr.msra.gmra.mrb[12].mxu1 %vm699_vm4, %v1166_v5 }
 0x443   : > { %2349 = vmatpush3.bf16.msra.mxu1 %v1277_v52  ;;  %2350 = vmatprep.mubr.msk.bf16.mxu1 %vm2711_vm3, %v2710_v18 }
 0x444   : > { %2360 = vmatprep.subr.bf16.mxu1 %v2710_v18 }
 0x449   : > { %v2544_v6 = vpop.eup %2543  ;;  %1107 = vmax.xlane.f32.xlu0 %v1106_v59 }
 0x44a   : > { %v1167_v7 = vpack.c.bf16 %v2544_v6, %v2544_v6 }
 0x44c   : > { %2345 = vmatmul.mubr.msk.bf16.vlgmr.msra.gmra.mrb[24].mxu0 %vm699_vm4, %v1167_v7 }
 0x44d   : > { %2355 = vmatpush3.bf16.msra.mxu0 %v1325_v8  ;;  %1113 = vmax.xlane.f32.xlu0 %v1112_v9 }
 0x44e   : > { %2356 = vmatprep.mubr.msk.bf16.mxu0 %vm2711_vm3, %v2710_v18  ;;  %2366 = vmatprep.subr.bf16.mxu0 %v2710_v18 }
 0x463   : > { %1463 = vrot.lane.b32.xlu0 %v2954_v56, %s2716_s17 }
 0x49d   : > { %v1102_v10 = vpop.xlane.xlu0 %1101 }
 0x49e   : > { %v1120_v11 = vsub.f32 %v3018_v27, %v1102_v10 }
 0x4a0   : > { %v1130_v12 = vmul.f32 1.442695, %v1120_v11 }
 0x4a1   : > { %v1105_v13 = vpop.xlane.xlu0 %1104 }
 0x4a2   : > { %2545 = vpow2.f32 %v1130_v12  ;;  %v1121_v14 = vsub.f32 %v3022_v31, %v1105_v13  ;;  %v1421_v31 = vsel %vm1179_vm5, %v1416_v15, 0 }
 0x4a4   : > { %v1132_v16 = vmul.f32 1.442695, %v1121_v14 }
 0x4a5   : > { %v1368_v22 = vpop.permute.xlu0 %1367 }
 0x4a6   : > { %2547 = vpow2.f32 %v1132_v16  ;;  %v1373_v24 = vsel %vm1179_vm5, %v1368_v22, 0 }
 0x4a7   : > { %v1111_v17 = vpop.xlane.xlu1 %1110 }
 0x4a8   : > { %v1123_v19 = vsub.f32 %v988_v40, %v1111_v17  ;;  %v1145_v40 = vsel %vm699_vm4, %v2544_v6, 0.0 }
 0x4aa   : > { %v1136_v20 = vmul.f32 1.442695, %v1123_v19 }
 0x4ac   : > { %v2546_v21 = vpop.eup %2545  ;;  %2549 = vpow2.f32 %v1136_v20 }
 0x4ad   : > { %v1148_v23 = vsel %vm699_vm4, %v2546_v21, 0.0  ;;  %v1168_v56 = vpack.c.bf16 %v2546_v21, %v2546_v21 }
 0x4ae   : > { %1149 = vadd.xlane.f32.xlu0 %v1148_v23 }
 0x4af   : > { %2351 = vmatmul.mubr.msk.bf16.vlgmr.msra.gmra.mrb[16].mxu1 %vm699_vm4, %v1168_v56  ;;  %v1117_v25 = vpop.xlane.xlu1 %1116 }
 0x4b0   : > { %v2548_v26 = vpop.eup %2547  ;;  %2361 = vmatpush3.bf16.msra.mxu1 %v1373_v24  ;;  %v1125_v27 = vsub.f32 %v3031_v49, %v1117_v25  ;;  %2362 = vmatprep.mubr.msk.bf16.mxu1 %vm2711_vm3, %v2710_v18 }
 0x4b1   : > { %v1151_v28 = vsel %vm699_vm4, %v2548_v26, 0.0  ;;  %v1169_v29 = vpack.c.bf16 %v2548_v26, %v2548_v26  ;;  %2372 = vmatprep.subr.bf16.mxu1 %v2710_v18 }
 0x4b2   : > { %v1140_v30 = vmul.f32 1.442695, %v1125_v27  ;;  %1152 = vadd.xlane.f32.xlu1 %v1151_v28 }
 0x4b3   : > { %2357 = vmatmul.mubr.msk.bf16.vlgmr.msra.gmra.mrb[28].mxu0 %vm699_vm4, %v1169_v29  ;;  %v1512_v33 = vpop.permute.xlu1 %1511  ;;  %v2525_v29 = vld [vmem:[%s2912_s29] sm:$0xff]  }
 0x4b4   : > { %2551 = vpow2.f32 %v1140_v30  ;;  %2367 = vmatpush3.bf16.msra.mxu0 %v1421_v31  ;;  %2368 = vmatprep.mubr.msk.bf16.mxu0 %vm2711_vm3, %v2710_v18  ;;  %v1517_v35 = vsel %vm1179_vm5, %v1512_v33, 0 }
 0x4b5   : > { %2378 = vmatprep.subr.bf16.mxu0 %v2710_v18 }
 0x4b6   : > { %v2550_v32 = vpop.eup %2549 }
 0x4b7   : > { %v1171_v34 = vpack.c.bf16 %v2550_v32, %v2550_v32 }
 0x4bb   : > { %2369 = vmatmul.mubr.msk.bf16.vlgmr.msra.gmra.mrb[32].mxu0 %vm699_vm4, %v1171_v34 }
 0x4bc   : > { %2379 = vmatpush3.bf16.msra.mxu0 %v1517_v35  ;;  %2380 = vmatprep.mubr.msk.bf16.mxu0 %vm2711_vm3, %v2710_v18 }
 0x4bd   : > { %2392 = vmatprep.subr.bf16.mxu0 %v2710_v18 }
 0x4be   : > { %v2552_v36 = vpop.eup %2551 }
 0x4bf   : > { %v1163_v38 = vsel %vm699_vm4, %v2552_v36, 0.0  ;;  %v1173_v39 = vpack.c.bf16 %v2552_v36, %v2552_v36 }
 0x4c0   : > { %1164 = vadd.xlane.f32.xlu1 %v1163_v38  ;;  %v2526_v38 = vld [vmem:[%s2912_s29 + $0x8] sm:$0xff]   ;;  %s1680_s29 = scalar_lea.vmem %s3292_s7, %s2691_s24 }
 0x4c3   : > { %2381 = vmatmul.mubr.msk.bf16.vlgmr.msra.gmra.mrb[36].mxu0 %vm699_vm4, %v1173_v39 }
 0x4c4   : > { %1146 = vadd.xlane.f32.xlu1 %v1145_v40  ;;  %2396 = vmatprep.mubr.msk.bf16.mxu0 %vm2711_vm3, %v2710_v18 }
 0x4d6   : > { %v1108_v41 = vpop.xlane.xlu0 %1107 }
 0x4d7   : > { %v1122_v42 = vsub.f32 %v3026_v37, %v1108_v41  ;;  %v1157_v37 = vsel %vm699_vm4, %v2550_v32, 0.0 }
 0x4d9   : > { %v1134_v43 = vmul.f32 1.442695, %v1122_v42 }
 0x4da   : > { %v1114_v44 = vpop.xlane.xlu0 %1113 }
 0x4db   : > { %2553 = vpow2.f32 %v1134_v43  ;;  %v1124_v45 = vsub.f32 %v3029_v46, %v1114_v44 }
 0x4dd   : > { %v1138_v47 = vmul.f32 1.442695, %v1124_v45 }
 0x4de   : > { %v1464_v49 = vpop.permute.xlu0 %1463 }
 0x4df   : > { %2555 = vpow2.f32 %v1138_v47  ;;  %v1469_v53 = vsel %vm1179_vm5, %v1464_v49, 0 }
 0x4e5   : > { %v2554_v48 = vpop.eup %2553 }
 0x4e6   : > { %v1154_v50 = vsel %vm699_vm4, %v2554_v48, 0.0  ;;  %v1170_v51 = vpack.c.bf16 %v2554_v48, %v2554_v48 }
 0x4e7   : > { %1155 = vadd.xlane.f32.xlu0 %v1154_v50 }
 0x4e8   : > { %2363 = vmatmul.mubr.msk.bf16.vlgmr.msra.gmra.mrb[20].mxu1 %vm699_vm4, %v1170_v51 }
 0x4e9   : > { %2373 = vmatpush3.bf16.msra.mxu1 %v1469_v53  ;;  %2374 = vmatprep.mubr.msk.bf16.mxu1 %vm2711_vm3, %v2710_v18  ;;  %v2556_v46 = vpop.eup %2555 }
 0x4ea   : > { %2384 = vmatprep.subr.bf16.mxu1 %v2710_v18  ;;  %v1160_v54 = vsel %vm699_vm4, %v2556_v46, 0.0  ;;  %v1172_v55 = vpack.c.bf16 %v2556_v46, %v2556_v46 }
 0x4eb   : > { %1158 = vadd.xlane.f32.xlu0 %v1157_v37 }
 0x4ef   : > { %1161 = vadd.xlane.f32.xlu0 %v1160_v54 }
 0x4f0   : > { %2375 = vmatmul.mubr.msk.bf16.vlgmr.msra.gmra.mrb[24].mxu1 %vm699_vm4, %v1172_v55 }
 0x4f1   : > { %2388 = vmatprep.mubr.msk.bf16.mxu1 %vm2711_vm3, %v2710_v18  ;;  %2385 = vmatpush3.bf16.msra.mxu1 %v2525_v29 }
 0x4f2   : > { %2386 = vmatprep.subr.bf16.mxu1 %v2710_v18 }
 0x4f3   : > { %1143 = vadd.xlane.f32.xlu0 %v1142_v57 }
 0x4f5   : > { %2387 = vmatpush3.bf16.msra.mxu1 %v2526_v38 }
 0x4f6   : > { %2400 = vmatprep.subr.bf16.mxu1 %v2710_v18 }
 0x515   : > { %v3099_v58 = vpop.f32.mrb[12].mxu1 }
 0x516   : > { %v2340_v60 = vpop.f32.mrb[13].mxu1 }
 0x517   : > { %v1220_v61 = vpop.f32.mrb[14].mxu1 }
 0x518   : > { %v2341_v62 = vpop.f32.mrb[15].mxu1 }
 0x51f   : > { %v3101_v63 = vpop.f32.mrb[24].mxu0 }
 0x520   : > { %v2346_v0 = vpop.f32.mrb[25].mxu0 }
 0x521   : > { %v1268_v1 = vpop.f32.mrb[26].mxu0 }
 0x522   : > { %v2347_v5 = vpop.f32.mrb[27].mxu0 }
 0x53b   : > { %v1150_v52 = vpop.xlane.xlu0 %1149 }
 0x53c   : > { %2557 = vrcp.f32 %v1150_v52 }
 0x53f   : > { %v1153_v59 = vpop.xlane.xlu1 %1152 }
 0x540   : > { %2559 = vrcp.f32 %v1153_v59 }
 0x546   : > { %v2558_v9 = vpop.eup %2557 }
 0x54a   : > { %v2560_v10 = vpop.eup %2559 }
 0x54d   : > { %v1165_v28 = vpop.xlane.xlu1 %1164 }
 0x551   : > { %v1147_v53 = vpop.xlane.xlu1 %1146 }
 0x574   : > { %v1156_v26 = vpop.xlane.xlu0 %1155 }
 0x575   : > { %2561 = vrcp.f32 %v1156_v26 }
 0x578   : > { %v1159_v27 = vpop.xlane.xlu0 %1158 }
 0x579   : > { %2563 = vrcp.f32 %v1159_v27 }
 0x57a   : > { %2565 = vrcp.f32 %v1165_v28 }
 0x57c   : > { %v1162_v30 = vpop.xlane.xlu0 %1161 }
 0x57d   : > { %2567 = vrcp.f32 %v1162_v30  ;;  %v2527_v30 = vld [vmem:[%s2918_s23] sm:$0xff]  }
 0x57e   : > { %2569 = vrcp.f32 %v1147_v53  ;;  %2393 = vmatpush3.bf16.msra.mxu0 %v2527_v30 }
 0x57f   : > { %v2562_v31 = vpop.eup %2561  ;;  %2394 = vmatprep.subr.bf16.mxu0 %v2710_v18 }
 0x580   : > { %v1144_v37 = vpop.xlane.xlu0 %1143 }
 0x581   : > { %2571 = vrcp.f32 %v1144_v37 }
 0x582   : > { %v1313_v6 = vpop.f32.mrb[16].mxu1 }
 0x583   : > { %v2352_v7 = vpop.f32.mrb[17].mxu1  ;;  %v1569_v12 = vmul.f32 %v2558_v9, %v1313_v6  ;;  %v2564_v32 = vpop.eup %2563 }
 0x584   : > { %v1316_v8 = vpop.f32.mrb[18].mxu1  ;;  %v2566_v42 = vpop.eup %2565 }
 0x585   : > { %v2353_v2 = vpop.f32.mrb[19].mxu1 }
 0x586   : > { %v1361_v11 = vpop.f32.mrb[28].mxu0 }
 0x587   : > { %v1570_v13 = vmul.f32 %v2560_v10, %v1361_v11  ;;  %v2358_v14 = vpop.f32.mrb[29].mxu0  ;;  %v2568_v43 = vpop.eup %2567 }
 0x588   : > { %v1364_v15 = vpop.f32.mrb[30].mxu0  ;;  %v2570_v54 = vpop.eup %2569 }
 0x589   : > { %v2508_v16 = vpack.i.bf16 %v1570_v13, %v1569_v12  ;;  %v2359_v17 = vpop.f32.mrb[31].mxu0  ;;  %v1568_v5 = vmul.f32 %v2570_v54, %v3101_v63 }
 0x58b   : > { %2509 = vrot.lane.b32.xlu0 %v2508_v16, %s3312_s19  ;;  %v2572_v57 = vpop.eup %2571 }
 0x58c   : > { %v1567_v1 = vmul.f32 %v2572_v57, %v3099_v58  ;;  %v2190_v58 = vld [vmem:[%s1614_s16] ss:$0 sm:$0xff] }
 0x58e   : > { %v1457_v19 = vpop.f32.mrb[32].mxu0 }
 0x58f   : > { %v2370_v20 = vpop.f32.mrb[33].mxu0  ;;  %v1572_v34 = vmul.f32 %v2564_v32, %v1457_v19 }
 0x590   : > { %v1460_v21 = vpop.f32.mrb[34].mxu0 }
 0x591   : > { %v2371_v22 = vpop.f32.mrb[35].mxu0 }
 0x596   : > { %v1553_v23 = vpop.f32.mrb[36].mxu0 }
 0x597   : > { %v2382_v56 = vpop.f32.mrb[37].mxu0  ;;  %v1574_v45 = vmul.f32 %v2566_v42, %v1553_v23 }
 0x598   : > { %v1556_v24 = vpop.f32.mrb[38].mxu0 }
 0x599   : > { %v2383_v25 = vpop.f32.mrb[39].mxu0 }
 0x5bb   : > { %v1409_v33 = vpop.f32.mrb[20].mxu1 }
 0x5bc   : > { %v1571_v35 = vmul.f32 %v2562_v31, %v1409_v33  ;;  %v2364_v36 = vpop.f32.mrb[21].mxu1  ;;  %v2528_v31 = vld [vmem:[%s2918_s23 + $0x8] sm:$0xff]   ;;  %s1733_s23 = scalar_lea.vmem %s3295_s10, %s2691_s24 }
 0x5bd   : > { %v1412_v39 = vpop.f32.mrb[22].mxu1  ;;  %2395 = vmatpush3.bf16.msra.mxu0 %v2528_v31 }
 0x5be   : > { %v2513_v40 = vpack.i.bf16 %v1572_v34, %v1571_v35  ;;  %v2365_v41 = vpop.f32.mrb[23].mxu1 }
 0x5c0   : > { %2514 = vrot.lane.b32.xlu1 %v2513_v40, %s2718_s30  ;;  %s3140_s30 = scalar_lea.vmem %s3296_s11, %s2228_s21  ;;  %s1682_s21 = scalar_lea.vmem %s3293_s8, %s2691_s24 }
 0x5c1   : > { %v2529_v32 = vld [vmem:[%s3140_s30] sm:$0xff]   ;;  %v2530_v33 = vld [vmem:[%s3140_s30 + $0x8] sm:$0xff]   ;;  %v2531_v34 = vld [vmem:[%s3140_s30 + $0x10] sm:$0xff]  }
 0x5c2   : > { %v2532_v35 = vld [vmem:[%s3140_s30 + $0x18] sm:$0xff]   ;;  %v2533_v36 = vld [vmem:[%s3140_s30 + $0x20] sm:$0xff]   ;;  %v2534_v38 = vld [vmem:[%s3140_s30 + $0x28] sm:$0xff]  }
 0x5c3   : > { %v1505_v44 = vpop.f32.mrb[24].mxu1  ;;  %v2195_v53 = vld [vmem:[%s1682_s21] ss:$0 sm:$0xff]  ;;  %v2535_v57 = vld [vmem:[%s3140_s30 + $0x30] sm:$0xff]  }
 0x5c4   : > { %v1573_v47 = vmul.f32 %v2568_v43, %v1505_v44  ;;  %v2376_v48 = vpop.f32.mrb[25].mxu1 }
 0x5c5   : > { %v1508_v49 = vpop.f32.mrb[26].mxu1  ;;  %v2194_v48 = vld [vmem:[%s1680_s29] ss:$0 sm:$0xff]  ;;  %s1849_s29 = scalar_lea.vmem %s3297_s12, %s2691_s24 }
 0x5c6   : > { %v2518_v50 = vpack.i.bf16 %v1574_v45, %v1573_v47  ;;  %v2377_v51 = vpop.f32.mrb[27].mxu1 }
 0x5c8   : > { %2519 = vrot.lane.b32.xlu1 %v2518_v50, %s2719_s0 }
 0x5fd   : > { %v2510_v46 = vpop.permute.xlu0 %2509 }
 0x5fe   : > { %v2512_v60 = vunpack.i.h.bf16 %v2510_v46  ;;  %v2511_v61 = vunpack.i.l.bf16 %v2510_v46 }
 0x600   : > { %v1600_v59 = vsel %vm699_vm4, %v1568_v5, %v2512_v60  ;;  %v1599_v6 = vsel %vm699_vm4, %v1567_v1, %v2511_v61  ;;  %v2536_v60 = vld [vmem:[%s3140_s30 + $0x38] sm:$0xff]   ;;  %v2197_v61 = vld [vmem:[%s1733_s23] ss:$0 sm:$0xff] }
 0x632   : > { %v2515_v55 = vpop.permute.xlu1 %2514 }
 0x633   : > { %v2517_v62 = vunpack.i.h.bf16 %v2515_v55  ;;  %v2516_v0 = vunpack.i.l.bf16 %v2515_v55 }
 0x635   : > { %v1603_v9 = vsel %vm1601_vm6, %v1600_v59, %v2517_v62  ;;  %v1602_v2 = vsel %vm1601_vm6, %v1599_v6, %v2516_v0 }
 0x63a   : > { %v2520_v52 = vpop.permute.xlu1 %2519 }
 0x63b   : > { %v2522_v7 = vunpack.i.h.bf16 %v2520_v52  ;;  %v2521_v8 = vunpack.i.l.bf16 %v2520_v52 }
 0x63d   : > { %v1606_v10 = vsel %vm1604_vm7, %v1603_v9, %v2522_v7  ;;  %v1605_v11 = vsel %vm1604_vm7, %v1602_v2, %v2521_v8 }
 0x63e   : > { %v1607_v12 = vpack.c.bf16 %v1606_v10, %v1605_v11 }
 0x640   : > { %2389 = vmatmul.mubr.msk.bf16.vlgmr.msra.gmra.mrb[28].mxu1 %vm563_vm2, %v1607_v12 }
 0x641   : > { %2416 = vmatprep.mubr.msk.bf16.mxu1 %vm2711_vm3, %v2710_v18  ;;  %2401 = vmatpush3.bf16.msra.mxu1 %v2529_v32 }
 0x642   : > { %2402 = vmatprep.subr.bf16.mxu1 %v2710_v18 }
 0x645   : > { %2403 = vmatpush3.bf16.msra.mxu1 %v2530_v33 }
 0x646   : > { %2404 = vmatprep.subr.bf16.mxu1 %v2710_v18 }
 0x649   : > { %2405 = vmatpush3.bf16.msra.mxu1 %v2531_v34 }
 0x64a   : > { %2406 = vmatprep.subr.bf16.mxu1 %v2710_v18 }
 0x64d   : > { %2407 = vmatpush3.bf16.msra.mxu1 %v2532_v35 }
 0x64e   : > { %2408 = vmatprep.subr.bf16.mxu1 %v2710_v18 }
 0x651   : > { %2409 = vmatpush3.bf16.msra.mxu1 %v2533_v36 }
 0x652   : > { %2410 = vmatprep.subr.bf16.mxu1 %v2710_v18 }
 0x655   : > { %2411 = vmatpush3.bf16.msra.mxu1 %v2534_v38 }
 0x656   : > { %2412 = vmatprep.subr.bf16.mxu1 %v2710_v18 }
 0x659   : > { %2413 = vmatpush3.bf16.msra.mxu1 %v2535_v57 }
 0x65a   : > { %2414 = vmatprep.subr.bf16.mxu1 %v2710_v18 }
 0x65d   : > { %2415 = vmatpush3.bf16.msra.mxu1 %v2536_v60 }
 0x713   : > { %v1671_v63 = vpop.f32.mrb[28].mxu1 }
 0x714   : > { %v1672_v13 = vadd.f32 %v2190_v58, %v1671_v63  ;;  %v2390_v14 = vpop.f32.mrb[29].mxu1 }
 0x715   : > { %v1674_v15 = vpop.f32.mrb[30].mxu1 }
 0x716   : > { %v3120_v16 = vadd.f32 %v1672_v13, %v2892_v3  ;;  %v1675_v17 = vadd.f32 %v2190_v58, %v1674_v15  ;;  %v2391_v19 = vpop.f32.mrb[31].mxu1  ;;  %v1821_v15 = vlaneseq }
 0x718   : > { %v3123_v20 = vadd.f32 %v1675_v17, %v2894_v4  ;;  %v1684_v21 = vsel %vm563_vm2, %v3120_v16, 0.0 }
 0x719   : > { %1685 = vadd.xlane.f32.xlu1 %v1684_v21  ;;  %v1822_v21 = vand.u32 127, %v1821_v15 }
 0x71a   : > { %v1687_v22 = vsel %vm563_vm2, %v3123_v20, 0.0 }
 0x71b   : > { %1688 = vadd.xlane.f32.xlu0 %v1687_v22  ;;  %v1823_v22 = vstv %s2691_s24 }
 0x71c   : > { %vm1824_vm10 = vcmp.eq.s32.totalorder %v1822_v21, %v1823_v22 }
 0x7a6   : > { %v1686_v23 = vpop.xlane.xlu1 %1685 }
 0x7a7   : > { %v1690_v56 = vmul.f32 0.03125, %v1686_v23 }
 0x7a8   : > { %v1689_v3 = vpop.xlane.xlu0 %1688 }
 0x7a9   : > { %v1692_v24 = vsub.f32 %v3120_v16, %v1690_v56  ;;  %v1691_v25 = vmul.f32 0.03125, %v1689_v3 }
 0x7ab   : > { %v1693_v4 = vsub.f32 %v3123_v20, %v1691_v25  ;;  %v1694_v26 = vmul.f32 %v1692_v24, %v1692_v24  ;;  %v2205_v25 = vld [vmem:[%s1849_s29] ss:$0 sm:$0xff] }
 0x7ad   : > { %v1696_v27 = vsel %vm563_vm2, %v1694_v26, 0.0  ;;  %v1695_v28 = vmul.f32 %v1693_v4, %v1693_v4 }
 0x7ae   : > { %1697 = vadd.xlane.f32.xlu0 %v1696_v27 }
 0x7af   : > { %v1699_v29 = vsel %vm563_vm2, %v1695_v28, 0.0 }
 0x7b2   : > { %1700 = vadd.xlane.f32.xlu0 %v1699_v29 }
 0x83b   : > { %v1698_v39 = vpop.xlane.xlu0 %1697 }
 0x83c   : > { %v1702_v40 = vmul.f32 0.03125, %v1698_v39 }
 0x83e   : > { %v1704_v41 = vadd.f32 1e-05, %v1702_v40 }
 0x83f   : > { %v1701_v42 = vpop.xlane.xlu0 %1700 }
 0x840   : > { %2573 = vrsqrt.f32 %v1704_v41  ;;  %v1703_v43 = vmul.f32 0.03125, %v1701_v42 }
 0x842   : > { %v1705_v44 = vadd.f32 1e-05, %v1703_v43 }
 0x844   : > { %2575 = vrsqrt.f32 %v1705_v44 }
 0x84a   : > { %v2574_v45 = vpop.eup %2573 }
 0x84b   : > { %v1708_v47 = vmul.f32 %v2574_v45, %v1692_v24 }
 0x84d   : > { %v1716_v50 = vmul.f32 %v2194_v48, %v1708_v47 }
 0x84e   : > { %v2576_v49 = vpop.eup %2575 }
 0x84f   : > { %v1709_v51 = vmul.f32 %v2576_v49, %v1693_v4  ;;  %v1724_v46 = vadd.f32 %v2195_v53, %v1716_v50 }
 0x851   : > { %v1717_v37 = vmul.f32 %v2194_v48, %v1709_v51 }
 0x853   : > { %v1725_v54 = vadd.f32 %v2195_v53, %v1717_v37  ;;  %v2215_v53 = vld [vmem:[%s3298_s13] ss:$0 sm:$0xff] (!%p2214_p0) }
 0x855   : > { %v1726_v55 = vpack.c.bf16 %v1725_v54, %v1724_v46  ;;  %v2216_v46 = vld [vmem:[%s3299_s14] ss:$0 sm:$0xff] (!%p2214_p0) }
 0x857   : > { %2397 = vmatmul.mubr.msk.bf16.vlgmr.msra.gmra.mrb[40].mxu0 %vm563_vm2, %v1726_v55 }
 0x92a   : > { %v1790_v62 = vpop.f32.mrb[40].mxu0 }
 0x92b   : > { %v1791_v0 = vadd.f32 %v2197_v61, %v1790_v62  ;;  %v2398_v1 = vpop.f32.mrb[41].mxu0 }
 0x92c   : > { %v1793_v5 = vpop.f32.mrb[42].mxu0 }
 0x92d   : > { %v1797_v52 = vmax.f32 %v1791_v0, 0.0  ;;  %v1794_v59 = vadd.f32 %v2197_v61, %v1793_v5  ;;  %v2399_v6 = vpop.f32.mrb[43].mxu0 }
 0x92f   : > { %v1798_v7 = vmax.f32 %v1794_v59, 0.0  ;;  %vm1799_vm8 = vcmp.eq.f32.partialorder %v1797_v52, 0.0 }
 0x930   : > { %v2201_v8 = vsel %vm1799_vm8, 1.0, %v2710_v18 }
 0x931   : > { %v1829_v9 = vpack.c.bf16 %v1798_v7, %v1797_v52  ;;  %1805 = vadd.xlane.f32.xlu1 %v2201_v8  ;;  %vm1800_vm9 = vcmp.eq.f32.partialorder %v1798_v7, 0.0 }
 0x932   : > { %v2202_v2 = vsel %vm1800_vm9, 1.0, %v2710_v18  ;;  %v1825_v18 = vld [vmem:[%s2888_s20] sm:$0x1] }
 0x933   : > { %2417 = vmatmul.mubr.bf16.vlgmr.msra.gmra.mrb[32].mxu1 %v1829_v9  ;;  %1807 = vadd.xlane.f32.xlu0 %v2202_v2 }
 0x9be   : > { %v1806_v10 = vpop.xlane.xlu1 %1805 }
 0x9bf   : > { %v1810_v12 = vmul.f32 0.0078125, %v1806_v10 }
 0x9c0   : > { %v1808_v11 = vpop.xlane.xlu0 %1807 }
 0x9c1   : > { %v1811_v58 = vmul.f32 0.0078125, %v1808_v11 }
 0x9c3   : > { %v1812_v63 = vadd.f32 %v1811_v58, %v1810_v12 }
 0x9c5   : > { %v1813_v13 = vrot.slane %v1812_v63, 4 }
 0x9c7   : > { %v1814_v14 = vadd.f32 %v1813_v13, %v1812_v63 }
 0x9c9   : > { %v1815_v17 = vrot.slane %v1814_v14, 2 }
 0x9cb   : > { %v1816_v19 = vadd.f32 %v1815_v17, %v1814_v14 }
 0x9cd   : > { %v1817_v23 = vrot.slane %v1816_v19, 1 }
 0x9cf   : > { %v1818_v56 = vadd.f32 %v1817_v23, %v1816_v19 }
 0x9d1   : > { %v1820_v3 = vmul.f32 0.0625, %v1818_v56 }
 0x9d3   : > { %v1826_v24 = vsel %vm1824_vm10, %v1820_v3, %v1825_v18 }
 0x9d4   : > { %1828 = vst.msk [vmem:[%s2888_s20] sm:$0x1] %vm1827_vm11, %v1826_v24 }
 0xa06   : > { %v1939_v4 = vpop.f32.mrb[32].mxu1 }
 0xa07   : > { %v1940_v26 = vadd.f32 %v2205_v25, %v1939_v4  ;;  %v2418_v27 = vpop.f32.mrb[33].mxu1  ;;  %1953 = sbr.rel (%p2214_p0) target bundleno = 2889 (0xb49), region = 88 }
 0xa08   : > { %v1942_v28 = vpop.f32.mrb[34].mxu1 }
 0xa09   : > { %v1946_v29 = vadd.f32 %v1940_v26, %v3120_v16  ;;  %v1943_v30 = vadd.f32 %v2205_v25, %v1942_v28  ;;  %v2419_v31 = vpop.f32.mrb[35].mxu1 }
 0xa0b   : > { %1948 = vst.msk [vmem:[#allocation2] sm:$0xff] %vm563_vm2, %v1946_v29  ;;  %v1947_v32 = vadd.f32 %v1943_v30, %v3123_v20  ;;  %v1956_v33 = vsel (!%p2214_p0), %vm563_vm2, %v1946_v29, 0.0 }
 0xa0c   : > { %1957 = vadd.xlane.f32.xlu0 (!%p2214_p0), %v1956_v33 }
 0xa0d   : > { %1949 = vst.msk [vmem:[#allocation2 + $0x8] sm:$0xff] %vm563_vm2, %v1947_v32  ;;  %v1959_v34 = vsel (!%p2214_p0), %vm563_vm2, %v1947_v32, 0.0 }
 0xa10   : > { %1960 = vadd.xlane.f32.xlu0 %v1959_v34 }
 0xa99   : > { %v1958_v35 = vpop.xlane.xlu0 %1957 }
 0xa9a   : > { %v1962_v36 = vmul.f32 0.03125, %v1958_v35 }
 0xa9c   : > { %v1964_v16 = vsub.f32 %v1946_v29, %v1962_v36 }
 0xa9d   : > { %v1961_v38 = vpop.xlane.xlu0 %1960 }
 0xa9e   : > { %v1963_v39 = vmul.f32 0.03125, %v1961_v38  ;;  %v1966_v40 = vmul.f32 %v1964_v16, %v1964_v16 }
 0xaa0   : > { %v1965_v41 = vsub.f32 %v1947_v32, %v1963_v39  ;;  %v1968_v20 = vsel %vm563_vm2, %v1966_v40, 0.0 }
 0xaa1   : > { %1969 = vadd.xlane.f32.xlu1 %v1968_v20 }
 0xaa2   : > { %v1967_v42 = vmul.f32 %v1965_v41, %v1965_v41 }
 0xaa4   : > { %v1971_v43 = vsel %vm563_vm2, %v1967_v42, 0.0 }
 0xaa5   : > { %1972 = vadd.xlane.f32.xlu1 %v1971_v43 }
 0xb2e   : > { %v1970_v44 = vpop.xlane.xlu1 %1969 }
 0xb2f   : > { %v1974_v45 = vmul.f32 0.03125, %v1970_v44 }
 0xb31   : > { %v1976_v47 = vadd.f32 1e-05, %v1974_v45 }
 0xb32   : > { %v1973_v48 = vpop.xlane.xlu1 %1972 }
 0xb33   : > { %2577 = vrsqrt.f32 %v1976_v47  ;;  %v1975_v49 = vmul.f32 0.03125, %v1973_v48 }
 0xb35   : > { %v1977_v50 = vadd.f32 1e-05, %v1975_v49 }
 0xb37   : > { %2579 = vrsqrt.f32 %v1977_v50 }
 0xb3d   : > { %v2578_v51 = vpop.eup %2577 }
 0xb3e   : > { %v1980_v37 = vmul.f32 %v2578_v51, %v1964_v16 }
 0xb40   : > { %v1988_v54 = vmul.f32 %v2215_v53, %v1980_v37 }
 0xb41   : > { %v2580_v55 = vpop.eup %2579 }
 0xb42   : > { %v1996_v57 = vadd.f32 %v2216_v46, %v1988_v54  ;;  %v1981_v60 = vmul.f32 %v2580_v55, %v1965_v41 }
 0xb44   : > { %1998 = vst.msk [vmem:[%s2885_s27] sm:$0xff] %vm563_vm2, %v1996_v57  ;;  %v1989_v61 = vmul.f32 %v2215_v53, %v1981_v60 }
 0xb46   : > { %v1997_v62 = vadd.f32 %v2216_v46, %v1989_v61 }
 0xb48   : > { %1999 = vst.msk [vmem:[%s2885_s27 + $0x8] sm:$0xff] %vm563_vm2, %v1997_v62 }
 0xb49 PF: > { %s2229_s28 = sshll.u32 %s2695_s25, 8  ;;  %s3340_s30 = sld [smem:[#allocation25_spill]] }
 0xb4a   : > { %s2018_s29 = sshll.u32 %s2885_s27, 4  ;;  %s2001_s24 = scalar_lea.sflag [#allocation4], %s2878_s26  ;;  %s3205_s29 = int_to_ptr.vmem [resolvable:$true] %s2018_s29 }
 0xb4b   : > { %s2581_s15 = scalar_lea.vmem %s3205_s29, 256  ;;  %s2720_s16 = smov [#allocation3]  }
 0xb4c   : > { %p2582_p1 = scmp.ne.s32.totalorder %s3205_s29, %s2581_s15  ;;  %s2585_s21 = sshll.u32 %s2720_s16, 4  ;;  %s2586_s21 = int_to_ptr.vmem [resolvable:$false] %s2585_s21 }
 0xb4d   : > { %s2587_s19 = scalar_lea.vmem %s2586_s21, 512  ;;  %p2588_p5 = scmp.lt.s32.totalorder %s3205_s29, %s2586_s21 }
 0xb4e   : > { %p2583_p2 = pnand %p2582_p1, %p2857_p3  ;;  %p2589_p6 = scmp.lt.s32.totalorder %s2587_s19, %s2581_s15 }
 0xb4f   : > { %s3202_s0 = scalar_lea.hbm %s3340_s30, %s2229_s28 }
 0xb50   : > { %p2584_p4 = pneg %p2583_p2  ;;  %p2590_p7 = por %p2589_p6, %p2588_p5 }
 0xb52   : > { %p2591_p8 = pnand %p2590_p7, %p2584_p4 }
 0xb54   : > { %2594 = shalt.err (!%p2591_p8)
}
 0xb55   : > { %s2595_s27 = scalar_lea.hbm %s3202_s0, 256  ;;  %s2599_s23 = scalar_lea.hbm %s3340_s30, 512 }
 0xb56   : > { %p2596_p10 = scmp.ne.s32.totalorder %s3202_s0, %s2595_s27  ;;  %p2600_p13 = scmp.lt.u32.totalorder %s3202_s0, %s3340_s30 }
 0xb57   : > { %p2601_p0 = scmp.lt.u32.totalorder %s2599_s23, %s2595_s27  ;;  %p2603_p2 = scmp.lt.u32.totalorder %s2595_s27, %s3202_s0 }
 0xb58   : > { %p2597_p11 = pnand %p2596_p10, %p2857_p3 }
 0xb59   : > { %p2602_p1 = por %p2601_p0, %p2600_p13 }
 0xb5a   : > { %p2598_p12 = pneg %p2597_p11 }
 0xb5b   : > { %p2604_p4 = por %p2603_p2, %p2602_p1 }
 0xb5d   : > { %p2605_p5 = pnand %p2604_p4, %p2598_p12 }
 0xb5f   : > { %2608 = shalt.err (!%p2605_p5)
}
 0xb60   : > { %s2721_s19 = smov 128   ;;  %s3341_s15 = smov 8  }
 0xb61   : > { %2420 = dma.vmem_to_hbm [thread:$0]  (%p2857_p3), %s3205_s29, 256, %s3202_s0, %s2001_s24, %s2721_s19, %s2721_s19, %s3341_s15  }
 0xb62   : > { %s2220_s28 = sshll.u32 %s2695_s25, 4  ;;  %s3342_s27 = sld [smem:[#allocation26_spill]] }
 0xb63   : > { %s2034_s1 = sshll.u32 %s2888_s20, 4  ;;  %s2006_s2 = scalar_lea.sflag [#allocation6], %s2878_s26  ;;  %s2035_s1 = int_to_ptr.vmem [resolvable:$true] %s2034_s1 }
 0xb64   : > { %s2609_s3 = scalar_lea.vmem %s2035_s1, 16  ;;  %s2722_s4 = smov [#allocation5]  }
 0xb65   : > { %p2610_p6 = scmp.ne.s32.totalorder %s2035_s1, %s2609_s3  ;;  %s2613_s5 = sshll.u32 %s2722_s4, 4  ;;  %s2614_s5 = int_to_ptr.vmem [resolvable:$false] %s2613_s5 }
 0xb66   : > { %s2615_s6 = scalar_lea.vmem %s2614_s5, 32  ;;  %p2616_p10 = scmp.lt.s32.totalorder %s2035_s1, %s2614_s5 }
 0xb67   : > { %p2611_p7 = pnand %p2610_p6, %p2857_p3  ;;  %p2617_p11 = scmp.lt.s32.totalorder %s2615_s6, %s2609_s3 }
 0xb68   : > { %s3343_s16 = smov %s3342_s27  ;;  %s3236_s21 = scalar_lea.hbm %s3342_s27, %s2220_s28 }
 0xb69   : > { %p2612_p8 = pneg %p2611_p7  ;;  %p2618_p12 = por %p2617_p11, %p2616_p10 }
 0xb6b   : > { %p2619_p13 = pnand %p2618_p12, %p2612_p8 }
 0xb6d   : > { %2622 = shalt.err (!%p2619_p13)
}
 0xb6e   : > { %s2623_s25 = scalar_lea.hbm %s3236_s21, 16  ;;  %s2627_s4 = scalar_lea.hbm %s3343_s16, 32 }
 0xb6f   : > { %p2624_p0 = scmp.ne.s32.totalorder %s3236_s21, %s2623_s25  ;;  %p2628_p4 = scmp.lt.u32.totalorder %s3236_s21, %s3343_s16 }
 0xb70   : > { %p2629_p5 = scmp.lt.u32.totalorder %s2627_s4, %s2623_s25  ;;  %p2631_p7 = scmp.lt.u32.totalorder %s2623_s25, %s3236_s21 }
 0xb71   : > { %p2625_p1 = pnand %p2624_p0, %p2857_p3 }
 0xb72   : > { %p2630_p6 = por %p2629_p5, %p2628_p4 }
 0xb73   : > { %p2626_p2 = pneg %p2625_p1 }
 0xb74   : > { %p2632_p8 = por %p2631_p7, %p2630_p6 }
 0xb76   : > { %p2633_p10 = pnand %p2632_p8, %p2626_p2 }
 0xb78   : > { %2636 = shalt.err (!%p2633_p10)
}
 0xb79   : > { %2421 = dma.vmem_to_hbm [thread:$0]  (%p2857_p3), %s2035_s1, 16, %s3236_s21, %s2006_s2  }
 0xb7a PF: > { %s3344_s3 = sld [smem:[#allocation13_spill]]  ;;  %s3345_s6 = sld [smem:[#allocation9_spill]] }
 0xb80   : > { %p2431_p11 = scmp.ge.s32.totalorder %s3344_s3, 2  ;;  %s2046_s24 = sand.u32 1, %s3345_s6  }
 0xb81   : > { %s2047_s19 = scalar_lea.sflag [#allocation4], %s2046_s24 }
 0xb82   : > { %p2425_p12 = pnand %p2431_p11, %p2867_p9 }
 0xb84   : > { %2670 = dma.done.wait (!%p2425_p12), %s2047_s19, 256  }
 0xb85   : > { %2672 = vsyncadd (!%p2425_p12), %s2047_s19, 4294967040  ;;  %s2056_s15 = scalar_lea.sflag [#allocation6], %s2046_s24 }
 0xb86   : > { %2674 = dma.done.wait (!%p2425_p12), %s2056_s15, 16  }
 0xb87   : > { %2676 = vsyncadd (!%p2425_p12), %s2056_s15, 4294967280  ;;  %s33_s28 = sadd.s32 1, %s3344_s3   ;;  %s3347_s18 = sld [smem:[#allocation10_spill]] }
 0xb88   : > { %p30_p13 = scmp.ge.s32.totalorder %s33_s28, 6   ;;  %s3348_s23 = sld [smem:[#allocation17_spill]] }
 0xb89   : > { %s3349_s24 = sld [smem:[#allocation11_spill]]  ;;  %s3350_s25 = sld [smem:[#allocation12_spill]] }
 0xb8a   : > { %s3351_s26 = sld [smem:[#allocation14_spill]]  ;;  %s3352_s27 = sld [smem:[#allocation15_spill]] }
 0xb8b   : > { %s3353_s21 = smov %s2683_s22  ;;  %32 = sbr.rel (!%p30_p13) target bundleno = 17 (0x11), region = 152 }
 0xb8d   : > { %s3354_s22 = smov %s3347_s18 }
 0xb92   :  { %2060 = vsyncpa [#allocation4], 1 }
 0xb93   :  { %2062 = vsyncpa [#allocation4 + $0x1], 1 }
 0xb94   :  { %2063 = vsyncpa [#allocation6], 1 }
 0xb95   :  { %2065 = vsyncpa [#allocation6 + $0x1], 1 }

</bundles_post_ra>
